<compile_context>
chip_gen: v5e
topology: v5e:2x2
jax: 0.10.0
libtpu: 0.0.40
codegen_flags: <defaults>
</compile_context>

<pallas_src>
import jax
import jax.numpy as jnp
from jax import lax
from jax.experimental import pallas as pl
from jax.experimental.pallas import tpu as pltpu

# ---------------- problem sizes (small, consistent with the module) ----------------
B = 2              # batch
C = 16             # in_channels == out_channels == groups (depthwise)
L = 128            # sequence length (multiple of 128 -> lane-dense)
K = 31             # kernel_size (module default)
PAD = (K - 1) // 2  # 'same' padding, stride=1, dilation=1
EPS = 1e-5         # BatchNorm1d default eps


def _dwconv_prelu_bn_kernel(x_ref, w_ref, alpha_ref, gb_ref, o_ref):
    """x_ref: (B, C, L) VMEM; w_ref: (K, 1, C, L) VMEM (lane-dense per-tap weights);
    alpha_ref: (1,) SMEM; gb_ref: (2, C, 1) VMEM (gamma, beta); o_ref: (B, C, L)."""
    x = x_ref[...]                                          # loaded once, (B, C, L)
    lane = lax.broadcasted_iota(jnp.int32, (1, 1, L), 2)

    # ---- depthwise conv: in-register lane rolls (XLU) + lane-dense VPU FMAs ----
    # out[l] = sum_s w[s+PAD] * x[l+s], x treated as zero outside [0, L) ('same').
    acc = x * w_ref[PAD]                                    # center tap (s=0), no mask
    for k in range(K):
        s = k - PAD                                         # shift in [-PAD, PAD]
        if s == 0:
            continue
        rolled = pltpu.roll(x, shift=(-s) % L, axis=2)      # rolled[l] = x[(l+s) % L]
        if s < 0:
            shifted = jnp.where(lane >= -s, rolled, 0.0)    # left 'same' padding
        else:
            shifted = jnp.where(lane < L - s, rolled, 0.0)  # right 'same' padding
        acc = acc + shifted * w_ref[k]                      # (1, C, L) weight plane

    # ---- PReLU (single shared parameter, read from SMEM scalar path) ----
    alpha = alpha_ref[0]
    y = jnp.where(acc > 0, acc, alpha * acc)

    # ---- BatchNorm1d, training-mode batch stats, single pass (sum & sum-sq) ----
    # (Single-pass E[y^2]-E[y]^2 is fine at N = B*L = 256 and these scales.)
    inv_n = 1.0 / (B * L)
    s1 = jnp.sum(y, axis=(0, 2), keepdims=True)             # (1, C, 1)
    s2 = jnp.sum(y * y, axis=(0, 2), keepdims=True)         # (1, C, 1)
    mean = s1 * inv_n
    var = s2 * inv_n - mean * mean                          # biased variance
    inv_std = lax.rsqrt(var + EPS)
    scale = gb_ref[0] * inv_std                             # gamma * inv_std -> (1, C, 1)
    shift = gb_ref[1] - mean * scale                        # beta - mean * scale
    # TODO(synk): BatchNorm running_mean/running_var momentum buffer updates are
    # not emitted; they do not affect this forward output.
    o_ref[...] = (y * scale + shift).astype(o_ref.dtype)


def depthwise_conv_prelu_bn(x, w, alpha, gamma, beta):
    """x: (B, C, L) f32, w: (C, K) f32, alpha: (1,) f32, gamma/beta: (1, C, 1) f32."""
    # Lane-dense per-tap weight planes: (K, 1, C, L). Kernel reads w_ref[k] -> (1, C, L)
    # so the tap multiply needs no in-kernel lane broadcast (pure VPU).
    w_bcast = jnp.broadcast_to(
        jnp.transpose(w)[:, None, :, None], (K, 1, C, L)).astype(jnp.float32)
    # Consolidate gamma/beta into one small parameter DMA.
    gb = jnp.concatenate([gamma, beta], axis=0)             # (2, C, 1)
    return pl.pallas_call(
        _dwconv_prelu_bn_kernel,
        out_shape=jax.ShapeDtypeStruct((B, C, L), jnp.float32),
        in_specs=[
            pl.BlockSpec(memory_space=pltpu.MemorySpace.VMEM),   # x
            pl.BlockSpec(memory_space=pltpu.MemorySpace.VMEM),   # broadcast weights
            pl.BlockSpec(memory_space=pltpu.MemorySpace.SMEM),   # PReLU scalar
            pl.BlockSpec(memory_space=pltpu.MemorySpace.VMEM),   # gamma/beta packed
        ],
        out_specs=pl.BlockSpec(memory_space=pltpu.MemorySpace.VMEM),
    )(x, w_bcast, alpha, gb)


def _reference(x, w, alpha, gamma, beta):
    """Pure-JAX reference matching PyTorch semantics (training-mode BN, bias=False)."""
    y = lax.conv_general_dilated(
        x, w.reshape(C, 1, K),
        window_strides=(1,), padding=[(PAD, PAD)],
        dimension_numbers=('NCH', 'OIH', 'NCH'),
        feature_group_count=C)
    a = alpha[0]
    y = jnp.where(y > 0, y, a * y)
    mean = jnp.mean(y, axis=(0, 2), keepdims=True)
    var = jnp.mean((y - mean) ** 2, axis=(0, 2), keepdims=True)
    return gamma * (y - mean) / jnp.sqrt(var + EPS) + beta


if __name__ == "__main__":
    key = jax.random.PRNGKey(0)
    kx, kw, kg, kb = jax.random.split(key, 4)

    x = jax.random.normal(kx, (B, C, L), dtype=jnp.float32)

    # Conv1d weight (out=C, in/groups=1, K) -> (C, K), kaiming-uniform bound 1/sqrt(K)
    bound = 1.0 / (K ** 0.5)
    w = jax.random.uniform(kw, (C, K), minval=-bound, maxval=bound, dtype=jnp.float32)
    alpha = jnp.full((1,), 0.25, dtype=jnp.float32)          # PReLU default init
    # PyTorch default BN init is gamma=1, beta=0; use perturbed values to
    # exercise the affine path in the correctness check (still deterministic).
    gamma = 1.0 + 0.1 * jax.random.normal(kg, (1, C, 1), dtype=jnp.float32)
    beta = 0.1 * jax.random.normal(kb, (1, C, 1), dtype=jnp.float32)

    out = depthwise_conv_prelu_bn(x, w, alpha, gamma, beta)
    out = jax.block_until_ready(out)

    ref = _reference(x, w, alpha, gamma, beta)
    assert out.shape == (B, C, L)
    assert jnp.allclose(out, ref, atol=1e-4, rtol=1e-4), "mismatch vs reference"

    print("KERNEL_OK")
</pallas_src>

<mosaic_0001>
module attributes {stable_mosaic.version = 11 : i64} {
  func.func @_dwconv_prelu_bn_kernel(%arg0: memref<2x16x128xf32, #tpu.memory_space<vmem>>, %arg1: memref<31x1x16x128xf32, #tpu.memory_space<vmem>>, %arg2: memref<1xf32, #tpu.memory_space<smem>>, %arg3: memref<2x16x1xf32, #tpu.memory_space<vmem>>, %arg4: memref<2x16x128xf32, #tpu.memory_space<vmem>>) attributes {dimension_semantics = [], scalar_prefetch = 0 : i64, scratch_operands = 0 : i64, tpu.core_type = #tpu.core_type<tc>} {
    %c0 = arith.constant 0 : index
    %c0_0 = arith.constant 0 : index
    %c0_1 = arith.constant 0 : index
    %0 = vector.load %arg0[%c0, %c0_0, %c0_1] : memref<2x16x128xf32, #tpu.memory_space<vmem>>, vector<2x16x128xf32>
    %1 = tpu.iota {dimensions = array<i32: 2>} : vector<1x1x128xi32>
    %c15 = arith.constant 15 : index
    %c0_2 = arith.constant 0 : index
    %c0_3 = arith.constant 0 : index
    %c0_4 = arith.constant 0 : index
    %2 = vector.load %arg1[%c15, %c0_2, %c0_3, %c0_4] : memref<31x1x16x128xf32, #tpu.memory_space<vmem>>, vector<1x1x16x128xf32>
    %3 = vector.shape_cast %2 : vector<1x1x16x128xf32> to vector<1x16x128xf32>
    %4 = vector.broadcast %3 : vector<1x16x128xf32> to vector<2x16x128xf32>
    %5 = arith.mulf %0, %4 : vector<2x16x128xf32>
    %c15_i32 = arith.constant 15 : i32
    %6 = tpu.dynamic_rotate %0 by %c15_i32 dim 2 : vector<2x16x128xf32>, i32 -> vector<2x16x128xf32>
    %c15_i32_5 = arith.constant 15 : i32
    %7 = vector.broadcast %c15_i32_5 : i32 to vector<1x1x128xi32>
    %8 = arith.cmpi sge, %1, %7 : vector<1x1x128xi32>
    %cst = arith.constant 0.000000e+00 : f32
    %9 = vector.shape_cast %8 : vector<1x1x128xi1> to vector<1x1x128xi1>
    %10 = vector.broadcast %9 : vector<1x1x128xi1> to vector<2x16x128xi1>
    %11 = vector.broadcast %cst : f32 to vector<2x16x128xf32>
    %12 = arith.select %10, %6, %11 : vector<2x16x128xi1>, vector<2x16x128xf32>
    %c0_6 = arith.constant 0 : index
    %c0_7 = arith.constant 0 : index
    %c0_8 = arith.constant 0 : index
    %c0_9 = arith.constant 0 : index
    %13 = vector.load %arg1[%c0_6, %c0_7, %c0_8, %c0_9] : memref<31x1x16x128xf32, #tpu.memory_space<vmem>>, vector<1x1x16x128xf32>
    %14 = vector.shape_cast %13 : vector<1x1x16x128xf32> to vector<1x16x128xf32>
    %15 = vector.broadcast %14 : vector<1x16x128xf32> to vector<2x16x128xf32>
    %16 = arith.mulf %12, %15 : vector<2x16x128xf32>
    %17 = arith.addf %5, %16 : vector<2x16x128xf32>
    %c14_i32 = arith.constant 14 : i32
    %18 = tpu.dynamic_rotate %0 by %c14_i32 dim 2 : vector<2x16x128xf32>, i32 -> vector<2x16x128xf32>
    %c14_i32_10 = arith.constant 14 : i32
    %19 = vector.broadcast %c14_i32_10 : i32 to vector<1x1x128xi32>
    %20 = arith.cmpi sge, %1, %19 : vector<1x1x128xi32>
    %cst_11 = arith.constant 0.000000e+00 : f32
    %21 = vector.shape_cast %20 : vector<1x1x128xi1> to vector<1x1x128xi1>
    %22 = vector.broadcast %21 : vector<1x1x128xi1> to vector<2x16x128xi1>
    %23 = vector.broadcast %cst_11 : f32 to vector<2x16x128xf32>
    %24 = arith.select %22, %18, %23 : vector<2x16x128xi1>, vector<2x16x128xf32>
    %c1 = arith.constant 1 : index
    %c0_12 = arith.constant 0 : index
    %c0_13 = arith.constant 0 : index
    %c0_14 = arith.constant 0 : index
    %25 = vector.load %arg1[%c1, %c0_12, %c0_13, %c0_14] : memref<31x1x16x128xf32, #tpu.memory_space<vmem>>, vector<1x1x16x128xf32>
    %26 = vector.shape_cast %25 : vector<1x1x16x128xf32> to vector<1x16x128xf32>
    %27 = vector.broadcast %26 : vector<1x16x128xf32> to vector<2x16x128xf32>
    %28 = arith.mulf %24, %27 : vector<2x16x128xf32>
    %29 = arith.addf %17, %28 : vector<2x16x128xf32>
    %c13_i32 = arith.constant 13 : i32
    %30 = tpu.dynamic_rotate %0 by %c13_i32 dim 2 : vector<2x16x128xf32>, i32 -> vector<2x16x128xf32>
    %c13_i32_15 = arith.constant 13 : i32
    %31 = vector.broadcast %c13_i32_15 : i32 to vector<1x1x128xi32>
    %32 = arith.cmpi sge, %1, %31 : vector<1x1x128xi32>
    %cst_16 = arith.constant 0.000000e+00 : f32
    %33 = vector.shape_cast %32 : vector<1x1x128xi1> to vector<1x1x128xi1>
    %34 = vector.broadcast %33 : vector<1x1x128xi1> to vector<2x16x128xi1>
    %35 = vector.broadcast %cst_16 : f32 to vector<2x16x128xf32>
    %36 = arith.select %34, %30, %35 : vector<2x16x128xi1>, vector<2x16x128xf32>
    %c2 = arith.constant 2 : index
    %c0_17 = arith.constant 0 : index
    %c0_18 = arith.constant 0 : index
    %c0_19 = arith.constant 0 : index
    %37 = vector.load %arg1[%c2, %c0_17, %c0_18, %c0_19] : memref<31x1x16x128xf32, #tpu.memory_space<vmem>>, vector<1x1x16x128xf32>
    %38 = vector.shape_cast %37 : vector<1x1x16x128xf32> to vector<1x16x128xf32>
    %39 = vector.broadcast %38 : vector<1x16x128xf32> to vector<2x16x128xf32>
    %40 = arith.mulf %36, %39 : vector<2x16x128xf32>
    %41 = arith.addf %29, %40 : vector<2x16x128xf32>
    %c12_i32 = arith.constant 12 : i32
    %42 = tpu.dynamic_rotate %0 by %c12_i32 dim 2 : vector<2x16x128xf32>, i32 -> vector<2x16x128xf32>
    %c12_i32_20 = arith.constant 12 : i32
    %43 = vector.broadcast %c12_i32_20 : i32 to vector<1x1x128xi32>
    %44 = arith.cmpi sge, %1, %43 : vector<1x1x128xi32>
    %cst_21 = arith.constant 0.000000e+00 : f32
    %45 = vector.shape_cast %44 : vector<1x1x128xi1> to vector<1x1x128xi1>
    %46 = vector.broadcast %45 : vector<1x1x128xi1> to vector<2x16x128xi1>
    %47 = vector.broadcast %cst_21 : f32 to vector<2x16x128xf32>
    %48 = arith.select %46, %42, %47 : vector<2x16x128xi1>, vector<2x16x128xf32>
    %c3 = arith.constant 3 : index
    %c0_22 = arith.constant 0 : index
    %c0_23 = arith.constant 0 : index
    %c0_24 = arith.constant 0 : index
    %49 = vector.load %arg1[%c3, %c0_22, %c0_23, %c0_24] : memref<31x1x16x128xf32, #tpu.memory_space<vmem>>, vector<1x1x16x128xf32>
    %50 = vector.shape_cast %49 : vector<1x1x16x128xf32> to vector<1x16x128xf32>
    %51 = vector.broadcast %50 : vector<1x16x128xf32> to vector<2x16x128xf32>
    %52 = arith.mulf %48, %51 : vector<2x16x128xf32>
    %53 = arith.addf %41, %52 : vector<2x16x128xf32>
    %c11_i32 = arith.constant 11 : i32
    %54 = tpu.dynamic_rotate %0 by %c11_i32 dim 2 : vector<2x16x128xf32>, i32 -> vector<2x16x128xf32>
    %c11_i32_25 = arith.constant 11 : i32
    %55 = vector.broadcast %c11_i32_25 : i32 to vector<1x1x128xi32>
    %56 = arith.cmpi sge, %1, %55 : vector<1x1x128xi32>
    %cst_26 = arith.constant 0.000000e+00 : f32
    %57 = vector.shape_cast %56 : vector<1x1x128xi1> to vector<1x1x128xi1>
    %58 = vector.broadcast %57 : vector<1x1x128xi1> to vector<2x16x128xi1>
    %59 = vector.broadcast %cst_26 : f32 to vector<2x16x128xf32>
    %60 = arith.select %58, %54, %59 : vector<2x16x128xi1>, vector<2x16x128xf32>
    %c4 = arith.constant 4 : index
    %c0_27 = arith.constant 0 : index
    %c0_28 = arith.constant 0 : index
    %c0_29 = arith.constant 0 : index
    %61 = vector.load %arg1[%c4, %c0_27, %c0_28, %c0_29] : memref<31x1x16x128xf32, #tpu.memory_space<vmem>>, vector<1x1x16x128xf32>
    %62 = vector.shape_cast %61 : vector<1x1x16x128xf32> to vector<1x16x128xf32>
    %63 = vector.broadcast %62 : vector<1x16x128xf32> to vector<2x16x128xf32>
    %64 = arith.mulf %60, %63 : vector<2x16x128xf32>
    %65 = arith.addf %53, %64 : vector<2x16x128xf32>
    %c10_i32 = arith.constant 10 : i32
    %66 = tpu.dynamic_rotate %0 by %c10_i32 dim 2 : vector<2x16x128xf32>, i32 -> vector<2x16x128xf32>
    %c10_i32_30 = arith.constant 10 : i32
    %67 = vector.broadcast %c10_i32_30 : i32 to vector<1x1x128xi32>
    %68 = arith.cmpi sge, %1, %67 : vector<1x1x128xi32>
    %cst_31 = arith.constant 0.000000e+00 : f32
    %69 = vector.shape_cast %68 : vector<1x1x128xi1> to vector<1x1x128xi1>
    %70 = vector.broadcast %69 : vector<1x1x128xi1> to vector<2x16x128xi1>
    %71 = vector.broadcast %cst_31 : f32 to vector<2x16x128xf32>
    %72 = arith.select %70, %66, %71 : vector<2x16x128xi1>, vector<2x16x128xf32>
    %c5 = arith.constant 5 : index
    %c0_32 = arith.constant 0 : index
    %c0_33 = arith.constant 0 : index
    %c0_34 = arith.constant 0 : index
    %73 = vector.load %arg1[%c5, %c0_32, %c0_33, %c0_34] : memref<31x1x16x128xf32, #tpu.memory_space<vmem>>, vector<1x1x16x128xf32>
    %74 = vector.shape_cast %73 : vector<1x1x16x128xf32> to vector<1x16x128xf32>
    %75 = vector.broadcast %74 : vector<1x16x128xf32> to vector<2x16x128xf32>
    %76 = arith.mulf %72, %75 : vector<2x16x128xf32>
    %77 = arith.addf %65, %76 : vector<2x16x128xf32>
    %c9_i32 = arith.constant 9 : i32
    %78 = tpu.dynamic_rotate %0 by %c9_i32 dim 2 : vector<2x16x128xf32>, i32 -> vector<2x16x128xf32>
    %c9_i32_35 = arith.constant 9 : i32
    %79 = vector.broadcast %c9_i32_35 : i32 to vector<1x1x128xi32>
    %80 = arith.cmpi sge, %1, %79 : vector<1x1x128xi32>
    %cst_36 = arith.constant 0.000000e+00 : f32
    %81 = vector.shape_cast %80 : vector<1x1x128xi1> to vector<1x1x128xi1>
    %82 = vector.broadcast %81 : vector<1x1x128xi1> to vector<2x16x128xi1>
    %83 = vector.broadcast %cst_36 : f32 to vector<2x16x128xf32>
    %84 = arith.select %82, %78, %83 : vector<2x16x128xi1>, vector<2x16x128xf32>
    %c6 = arith.constant 6 : index
    %c0_37 = arith.constant 0 : index
    %c0_38 = arith.constant 0 : index
    %c0_39 = arith.constant 0 : index
    %85 = vector.load %arg1[%c6, %c0_37, %c0_38, %c0_39] : memref<31x1x16x128xf32, #tpu.memory_space<vmem>>, vector<1x1x16x128xf32>
    %86 = vector.shape_cast %85 : vector<1x1x16x128xf32> to vector<1x16x128xf32>
    %87 = vector.broadcast %86 : vector<1x16x128xf32> to vector<2x16x128xf32>
    %88 = arith.mulf %84, %87 : vector<2x16x128xf32>
    %89 = arith.addf %77, %88 : vector<2x16x128xf32>
    %c8_i32 = arith.constant 8 : i32
    %90 = tpu.dynamic_rotate %0 by %c8_i32 dim 2 : vector<2x16x128xf32>, i32 -> vector<2x16x128xf32>
    %c8_i32_40 = arith.constant 8 : i32
    %91 = vector.broadcast %c8_i32_40 : i32 to vector<1x1x128xi32>
    %92 = arith.cmpi sge, %1, %91 : vector<1x1x128xi32>
    %cst_41 = arith.constant 0.000000e+00 : f32
    %93 = vector.shape_cast %92 : vector<1x1x128xi1> to vector<1x1x128xi1>
    %94 = vector.broadcast %93 : vector<1x1x128xi1> to vector<2x16x128xi1>
    %95 = vector.broadcast %cst_41 : f32 to vector<2x16x128xf32>
    %96 = arith.select %94, %90, %95 : vector<2x16x128xi1>, vector<2x16x128xf32>
    %c7 = arith.constant 7 : index
    %c0_42 = arith.constant 0 : index
    %c0_43 = arith.constant 0 : index
    %c0_44 = arith.constant 0 : index
    %97 = vector.load %arg1[%c7, %c0_42, %c0_43, %c0_44] : memref<31x1x16x128xf32, #tpu.memory_space<vmem>>, vector<1x1x16x128xf32>
    %98 = vector.shape_cast %97 : vector<1x1x16x128xf32> to vector<1x16x128xf32>
    %99 = vector.broadcast %98 : vector<1x16x128xf32> to vector<2x16x128xf32>
    %100 = arith.mulf %96, %99 : vector<2x16x128xf32>
    %101 = arith.addf %89, %100 : vector<2x16x128xf32>
    %c7_i32 = arith.constant 7 : i32
    %102 = tpu.dynamic_rotate %0 by %c7_i32 dim 2 : vector<2x16x128xf32>, i32 -> vector<2x16x128xf32>
    %c7_i32_45 = arith.constant 7 : i32
    %103 = vector.broadcast %c7_i32_45 : i32 to vector<1x1x128xi32>
    %104 = arith.cmpi sge, %1, %103 : vector<1x1x128xi32>
    %cst_46 = arith.constant 0.000000e+00 : f32
    %105 = vector.shape_cast %104 : vector<1x1x128xi1> to vector<1x1x128xi1>
    %106 = vector.broadcast %105 : vector<1x1x128xi1> to vector<2x16x128xi1>
    %107 = vector.broadcast %cst_46 : f32 to vector<2x16x128xf32>
    %108 = arith.select %106, %102, %107 : vector<2x16x128xi1>, vector<2x16x128xf32>
    %c8 = arith.constant 8 : index
    %c0_47 = arith.constant 0 : index
    %c0_48 = arith.constant 0 : index
    %c0_49 = arith.constant 0 : index
    %109 = vector.load %arg1[%c8, %c0_47, %c0_48, %c0_49] : memref<31x1x16x128xf32, #tpu.memory_space<vmem>>, vector<1x1x16x128xf32>
    %110 = vector.shape_cast %109 : vector<1x1x16x128xf32> to vector<1x16x128xf32>
    %111 = vector.broadcast %110 : vector<1x16x128xf32> to vector<2x16x128xf32>
    %112 = arith.mulf %108, %111 : vector<2x16x128xf32>
    %113 = arith.addf %101, %112 : vector<2x16x128xf32>
    %c6_i32 = arith.constant 6 : i32
    %114 = tpu.dynamic_rotate %0 by %c6_i32 dim 2 : vector<2x16x128xf32>, i32 -> vector<2x16x128xf32>
    %c6_i32_50 = arith.constant 6 : i32
    %115 = vector.broadcast %c6_i32_50 : i32 to vector<1x1x128xi32>
    %116 = arith.cmpi sge, %1, %115 : vector<1x1x128xi32>
    %cst_51 = arith.constant 0.000000e+00 : f32
    %117 = vector.shape_cast %116 : vector<1x1x128xi1> to vector<1x1x128xi1>
    %118 = vector.broadcast %117 : vector<1x1x128xi1> to vector<2x16x128xi1>
    %119 = vector.broadcast %cst_51 : f32 to vector<2x16x128xf32>
    %120 = arith.select %118, %114, %119 : vector<2x16x128xi1>, vector<2x16x128xf32>
    %c9 = arith.constant 9 : index
    %c0_52 = arith.constant 0 : index
    %c0_53 = arith.constant 0 : index
    %c0_54 = arith.constant 0 : index
    %121 = vector.load %arg1[%c9, %c0_52, %c0_53, %c0_54] : memref<31x1x16x128xf32, #tpu.memory_space<vmem>>, vector<1x1x16x128xf32>
    %122 = vector.shape_cast %121 : vector<1x1x16x128xf32> to vector<1x16x128xf32>
    %123 = vector.broadcast %122 : vector<1x16x128xf32> to vector<2x16x128xf32>
    %124 = arith.mulf %120, %123 : vector<2x16x128xf32>
    %125 = arith.addf %113, %124 : vector<2x16x128xf32>
    %c5_i32 = arith.constant 5 : i32
    %126 = tpu.dynamic_rotate %0 by %c5_i32 dim 2 : vector<2x16x128xf32>, i32 -> vector<2x16x128xf32>
    %c5_i32_55 = arith.constant 5 : i32
    %127 = vector.broadcast %c5_i32_55 : i32 to vector<1x1x128xi32>
    %128 = arith.cmpi sge, %1, %127 : vector<1x1x128xi32>
    %cst_56 = arith.constant 0.000000e+00 : f32
    %129 = vector.shape_cast %128 : vector<1x1x128xi1> to vector<1x1x128xi1>
    %130 = vector.broadcast %129 : vector<1x1x128xi1> to vector<2x16x128xi1>
    %131 = vector.broadcast %cst_56 : f32 to vector<2x16x128xf32>
    %132 = arith.select %130, %126, %131 : vector<2x16x128xi1>, vector<2x16x128xf32>
    %c10 = arith.constant 10 : index
    %c0_57 = arith.constant 0 : index
    %c0_58 = arith.constant 0 : index
    %c0_59 = arith.constant 0 : index
    %133 = vector.load %arg1[%c10, %c0_57, %c0_58, %c0_59] : memref<31x1x16x128xf32, #tpu.memory_space<vmem>>, vector<1x1x16x128xf32>
    %134 = vector.shape_cast %133 : vector<1x1x16x128xf32> to vector<1x16x128xf32>
    %135 = vector.broadcast %134 : vector<1x16x128xf32> to vector<2x16x128xf32>
    %136 = arith.mulf %132, %135 : vector<2x16x128xf32>
    %137 = arith.addf %125, %136 : vector<2x16x128xf32>
    %c4_i32 = arith.constant 4 : i32
    %138 = tpu.dynamic_rotate %0 by %c4_i32 dim 2 : vector<2x16x128xf32>, i32 -> vector<2x16x128xf32>
    %c4_i32_60 = arith.constant 4 : i32
    %139 = vector.broadcast %c4_i32_60 : i32 to vector<1x1x128xi32>
    %140 = arith.cmpi sge, %1, %139 : vector<1x1x128xi32>
    %cst_61 = arith.constant 0.000000e+00 : f32
    %141 = vector.shape_cast %140 : vector<1x1x128xi1> to vector<1x1x128xi1>
    %142 = vector.broadcast %141 : vector<1x1x128xi1> to vector<2x16x128xi1>
    %143 = vector.broadcast %cst_61 : f32 to vector<2x16x128xf32>
    %144 = arith.select %142, %138, %143 : vector<2x16x128xi1>, vector<2x16x128xf32>
    %c11 = arith.constant 11 : index
    %c0_62 = arith.constant 0 : index
    %c0_63 = arith.constant 0 : index
    %c0_64 = arith.constant 0 : index
    %145 = vector.load %arg1[%c11, %c0_62, %c0_63, %c0_64] : memref<31x1x16x128xf32, #tpu.memory_space<vmem>>, vector<1x1x16x128xf32>
    %146 = vector.shape_cast %145 : vector<1x1x16x128xf32> to vector<1x16x128xf32>
    %147 = vector.broadcast %146 : vector<1x16x128xf32> to vector<2x16x128xf32>
    %148 = arith.mulf %144, %147 : vector<2x16x128xf32>
    %149 = arith.addf %137, %148 : vector<2x16x128xf32>
    %c3_i32 = arith.constant 3 : i32
    %150 = tpu.dynamic_rotate %0 by %c3_i32 dim 2 : vector<2x16x128xf32>, i32 -> vector<2x16x128xf32>
    %c3_i32_65 = arith.constant 3 : i32
    %151 = vector.broadcast %c3_i32_65 : i32 to vector<1x1x128xi32>
    %152 = arith.cmpi sge, %1, %151 : vector<1x1x128xi32>
    %cst_66 = arith.constant 0.000000e+00 : f32
    %153 = vector.shape_cast %152 : vector<1x1x128xi1> to vector<1x1x128xi1>
    %154 = vector.broadcast %153 : vector<1x1x128xi1> to vector<2x16x128xi1>
    %155 = vector.broadcast %cst_66 : f32 to vector<2x16x128xf32>
    %156 = arith.select %154, %150, %155 : vector<2x16x128xi1>, vector<2x16x128xf32>
    %c12 = arith.constant 12 : index
    %c0_67 = arith.constant 0 : index
    %c0_68 = arith.constant 0 : index
    %c0_69 = arith.constant 0 : index
    %157 = vector.load %arg1[%c12, %c0_67, %c0_68, %c0_69] : memref<31x1x16x128xf32, #tpu.memory_space<vmem>>, vector<1x1x16x128xf32>
    %158 = vector.shape_cast %157 : vector<1x1x16x128xf32> to vector<1x16x128xf32>
    %159 = vector.broadcast %158 : vector<1x16x128xf32> to vector<2x16x128xf32>
    %160 = arith.mulf %156, %159 : vector<2x16x128xf32>
    %161 = arith.addf %149, %160 : vector<2x16x128xf32>
    %c2_i32 = arith.constant 2 : i32
    %162 = tpu.dynamic_rotate %0 by %c2_i32 dim 2 : vector<2x16x128xf32>, i32 -> vector<2x16x128xf32>
    %c2_i32_70 = arith.constant 2 : i32
    %163 = vector.broadcast %c2_i32_70 : i32 to vector<1x1x128xi32>
    %164 = arith.cmpi sge, %1, %163 : vector<1x1x128xi32>
    %cst_71 = arith.constant 0.000000e+00 : f32
    %165 = vector.shape_cast %164 : vector<1x1x128xi1> to vector<1x1x128xi1>
    %166 = vector.broadcast %165 : vector<1x1x128xi1> to vector<2x16x128xi1>
    %167 = vector.broadcast %cst_71 : f32 to vector<2x16x128xf32>
    %168 = arith.select %166, %162, %167 : vector<2x16x128xi1>, vector<2x16x128xf32>
    %c13 = arith.constant 13 : index
    %c0_72 = arith.constant 0 : index
    %c0_73 = arith.constant 0 : index
    %c0_74 = arith.constant 0 : index
    %169 = vector.load %arg1[%c13, %c0_72, %c0_73, %c0_74] : memref<31x1x16x128xf32, #tpu.memory_space<vmem>>, vector<1x1x16x128xf32>
    %170 = vector.shape_cast %169 : vector<1x1x16x128xf32> to vector<1x16x128xf32>
    %171 = vector.broadcast %170 : vector<1x16x128xf32> to vector<2x16x128xf32>
    %172 = arith.mulf %168, %171 : vector<2x16x128xf32>
    %173 = arith.addf %161, %172 : vector<2x16x128xf32>
    %c1_i32 = arith.constant 1 : i32
    %174 = tpu.dynamic_rotate %0 by %c1_i32 dim 2 : vector<2x16x128xf32>, i32 -> vector<2x16x128xf32>
    %c1_i32_75 = arith.constant 1 : i32
    %175 = vector.broadcast %c1_i32_75 : i32 to vector<1x1x128xi32>
    %176 = arith.cmpi sge, %1, %175 : vector<1x1x128xi32>
    %cst_76 = arith.constant 0.000000e+00 : f32
    %177 = vector.shape_cast %176 : vector<1x1x128xi1> to vector<1x1x128xi1>
    %178 = vector.broadcast %177 : vector<1x1x128xi1> to vector<2x16x128xi1>
    %179 = vector.broadcast %cst_76 : f32 to vector<2x16x128xf32>
    %180 = arith.select %178, %174, %179 : vector<2x16x128xi1>, vector<2x16x128xf32>
    %c14 = arith.constant 14 : index
    %c0_77 = arith.constant 0 : index
    %c0_78 = arith.constant 0 : index
    %c0_79 = arith.constant 0 : index
    %181 = vector.load %arg1[%c14, %c0_77, %c0_78, %c0_79] : memref<31x1x16x128xf32, #tpu.memory_space<vmem>>, vector<1x1x16x128xf32>
    %182 = vector.shape_cast %181 : vector<1x1x16x128xf32> to vector<1x16x128xf32>
    %183 = vector.broadcast %182 : vector<1x16x128xf32> to vector<2x16x128xf32>
    %184 = arith.mulf %180, %183 : vector<2x16x128xf32>
    %185 = arith.addf %173, %184 : vector<2x16x128xf32>
    %c127_i32 = arith.constant 127 : i32
    %186 = tpu.dynamic_rotate %0 by %c127_i32 dim 2 : vector<2x16x128xf32>, i32 -> vector<2x16x128xf32>
    %c127_i32_80 = arith.constant 127 : i32
    %187 = vector.broadcast %c127_i32_80 : i32 to vector<1x1x128xi32>
    %188 = arith.cmpi slt, %1, %187 : vector<1x1x128xi32>
    %cst_81 = arith.constant 0.000000e+00 : f32
    %189 = vector.shape_cast %188 : vector<1x1x128xi1> to vector<1x1x128xi1>
    %190 = vector.broadcast %189 : vector<1x1x128xi1> to vector<2x16x128xi1>
    %191 = vector.broadcast %cst_81 : f32 to vector<2x16x128xf32>
    %192 = arith.select %190, %186, %191 : vector<2x16x128xi1>, vector<2x16x128xf32>
    %c16 = arith.constant 16 : index
    %c0_82 = arith.constant 0 : index
    %c0_83 = arith.constant 0 : index
    %c0_84 = arith.constant 0 : index
    %193 = vector.load %arg1[%c16, %c0_82, %c0_83, %c0_84] : memref<31x1x16x128xf32, #tpu.memory_space<vmem>>, vector<1x1x16x128xf32>
    %194 = vector.shape_cast %193 : vector<1x1x16x128xf32> to vector<1x16x128xf32>
    %195 = vector.broadcast %194 : vector<1x16x128xf32> to vector<2x16x128xf32>
    %196 = arith.mulf %192, %195 : vector<2x16x128xf32>
    %197 = arith.addf %185, %196 : vector<2x16x128xf32>
    %c126_i32 = arith.constant 126 : i32
    %198 = tpu.dynamic_rotate %0 by %c126_i32 dim 2 : vector<2x16x128xf32>, i32 -> vector<2x16x128xf32>
    %c126_i32_85 = arith.constant 126 : i32
    %199 = vector.broadcast %c126_i32_85 : i32 to vector<1x1x128xi32>
    %200 = arith.cmpi slt, %1, %199 : vector<1x1x128xi32>
    %cst_86 = arith.constant 0.000000e+00 : f32
    %201 = vector.shape_cast %200 : vector<1x1x128xi1> to vector<1x1x128xi1>
    %202 = vector.broadcast %201 : vector<1x1x128xi1> to vector<2x16x128xi1>
    %203 = vector.broadcast %cst_86 : f32 to vector<2x16x128xf32>
    %204 = arith.select %202, %198, %203 : vector<2x16x128xi1>, vector<2x16x128xf32>
    %c17 = arith.constant 17 : index
    %c0_87 = arith.constant 0 : index
    %c0_88 = arith.constant 0 : index
    %c0_89 = arith.constant 0 : index
    %205 = vector.load %arg1[%c17, %c0_87, %c0_88, %c0_89] : memref<31x1x16x128xf32, #tpu.memory_space<vmem>>, vector<1x1x16x128xf32>
    %206 = vector.shape_cast %205 : vector<1x1x16x128xf32> to vector<1x16x128xf32>
    %207 = vector.broadcast %206 : vector<1x16x128xf32> to vector<2x16x128xf32>
    %208 = arith.mulf %204, %207 : vector<2x16x128xf32>
    %209 = arith.addf %197, %208 : vector<2x16x128xf32>
    %c125_i32 = arith.constant 125 : i32
    %210 = tpu.dynamic_rotate %0 by %c125_i32 dim 2 : vector<2x16x128xf32>, i32 -> vector<2x16x128xf32>
    %c125_i32_90 = arith.constant 125 : i32
    %211 = vector.broadcast %c125_i32_90 : i32 to vector<1x1x128xi32>
    %212 = arith.cmpi slt, %1, %211 : vector<1x1x128xi32>
    %cst_91 = arith.constant 0.000000e+00 : f32
    %213 = vector.shape_cast %212 : vector<1x1x128xi1> to vector<1x1x128xi1>
    %214 = vector.broadcast %213 : vector<1x1x128xi1> to vector<2x16x128xi1>
    %215 = vector.broadcast %cst_91 : f32 to vector<2x16x128xf32>
    %216 = arith.select %214, %210, %215 : vector<2x16x128xi1>, vector<2x16x128xf32>
    %c18 = arith.constant 18 : index
    %c0_92 = arith.constant 0 : index
    %c0_93 = arith.constant 0 : index
    %c0_94 = arith.constant 0 : index
    %217 = vector.load %arg1[%c18, %c0_92, %c0_93, %c0_94] : memref<31x1x16x128xf32, #tpu.memory_space<vmem>>, vector<1x1x16x128xf32>
    %218 = vector.shape_cast %217 : vector<1x1x16x128xf32> to vector<1x16x128xf32>
    %219 = vector.broadcast %218 : vector<1x16x128xf32> to vector<2x16x128xf32>
    %220 = arith.mulf %216, %219 : vector<2x16x128xf32>
    %221 = arith.addf %209, %220 : vector<2x16x128xf32>
    %c124_i32 = arith.constant 124 : i32
    %222 = tpu.dynamic_rotate %0 by %c124_i32 dim 2 : vector<2x16x128xf32>, i32 -> vector<2x16x128xf32>
    %c124_i32_95 = arith.constant 124 : i32
    %223 = vector.broadcast %c124_i32_95 : i32 to vector<1x1x128xi32>
    %224 = arith.cmpi slt, %1, %223 : vector<1x1x128xi32>
    %cst_96 = arith.constant 0.000000e+00 : f32
    %225 = vector.shape_cast %224 : vector<1x1x128xi1> to vector<1x1x128xi1>
    %226 = vector.broadcast %225 : vector<1x1x128xi1> to vector<2x16x128xi1>
    %227 = vector.broadcast %cst_96 : f32 to vector<2x16x128xf32>
    %228 = arith.select %226, %222, %227 : vector<2x16x128xi1>, vector<2x16x128xf32>
    %c19 = arith.constant 19 : index
    %c0_97 = arith.constant 0 : index
    %c0_98 = arith.constant 0 : index
    %c0_99 = arith.constant 0 : index
    %229 = vector.load %arg1[%c19, %c0_97, %c0_98, %c0_99] : memref<31x1x16x128xf32, #tpu.memory_space<vmem>>, vector<1x1x16x128xf32>
    %230 = vector.shape_cast %229 : vector<1x1x16x128xf32> to vector<1x16x128xf32>
    %231 = vector.broadcast %230 : vector<1x16x128xf32> to vector<2x16x128xf32>
    %232 = arith.mulf %228, %231 : vector<2x16x128xf32>
    %233 = arith.addf %221, %232 : vector<2x16x128xf32>
    %c123_i32 = arith.constant 123 : i32
    %234 = tpu.dynamic_rotate %0 by %c123_i32 dim 2 : vector<2x16x128xf32>, i32 -> vector<2x16x128xf32>
    %c123_i32_100 = arith.constant 123 : i32
    %235 = vector.broadcast %c123_i32_100 : i32 to vector<1x1x128xi32>
    %236 = arith.cmpi slt, %1, %235 : vector<1x1x128xi32>
    %cst_101 = arith.constant 0.000000e+00 : f32
    %237 = vector.shape_cast %236 : vector<1x1x128xi1> to vector<1x1x128xi1>
    %238 = vector.broadcast %237 : vector<1x1x128xi1> to vector<2x16x128xi1>
    %239 = vector.broadcast %cst_101 : f32 to vector<2x16x128xf32>
    %240 = arith.select %238, %234, %239 : vector<2x16x128xi1>, vector<2x16x128xf32>
    %c20 = arith.constant 20 : index
    %c0_102 = arith.constant 0 : index
    %c0_103 = arith.constant 0 : index
    %c0_104 = arith.constant 0 : index
    %241 = vector.load %arg1[%c20, %c0_102, %c0_103, %c0_104] : memref<31x1x16x128xf32, #tpu.memory_space<vmem>>, vector<1x1x16x128xf32>
    %242 = vector.shape_cast %241 : vector<1x1x16x128xf32> to vector<1x16x128xf32>
    %243 = vector.broadcast %242 : vector<1x16x128xf32> to vector<2x16x128xf32>
    %244 = arith.mulf %240, %243 : vector<2x16x128xf32>
    %245 = arith.addf %233, %244 : vector<2x16x128xf32>
    %c122_i32 = arith.constant 122 : i32
    %246 = tpu.dynamic_rotate %0 by %c122_i32 dim 2 : vector<2x16x128xf32>, i32 -> vector<2x16x128xf32>
    %c122_i32_105 = arith.constant 122 : i32
    %247 = vector.broadcast %c122_i32_105 : i32 to vector<1x1x128xi32>
    %248 = arith.cmpi slt, %1, %247 : vector<1x1x128xi32>
    %cst_106 = arith.constant 0.000000e+00 : f32
    %249 = vector.shape_cast %248 : vector<1x1x128xi1> to vector<1x1x128xi1>
    %250 = vector.broadcast %249 : vector<1x1x128xi1> to vector<2x16x128xi1>
    %251 = vector.broadcast %cst_106 : f32 to vector<2x16x128xf32>
    %252 = arith.select %250, %246, %251 : vector<2x16x128xi1>, vector<2x16x128xf32>
    %c21 = arith.constant 21 : index
    %c0_107 = arith.constant 0 : index
    %c0_108 = arith.constant 0 : index
    %c0_109 = arith.constant 0 : index
    %253 = vector.load %arg1[%c21, %c0_107, %c0_108, %c0_109] : memref<31x1x16x128xf32, #tpu.memory_space<vmem>>, vector<1x1x16x128xf32>
    %254 = vector.shape_cast %253 : vector<1x1x16x128xf32> to vector<1x16x128xf32>
    %255 = vector.broadcast %254 : vector<1x16x128xf32> to vector<2x16x128xf32>
    %256 = arith.mulf %252, %255 : vector<2x16x128xf32>
    %257 = arith.addf %245, %256 : vector<2x16x128xf32>
    %c121_i32 = arith.constant 121 : i32
    %258 = tpu.dynamic_rotate %0 by %c121_i32 dim 2 : vector<2x16x128xf32>, i32 -> vector<2x16x128xf32>
    %c121_i32_110 = arith.constant 121 : i32
    %259 = vector.broadcast %c121_i32_110 : i32 to vector<1x1x128xi32>
    %260 = arith.cmpi slt, %1, %259 : vector<1x1x128xi32>
    %cst_111 = arith.constant 0.000000e+00 : f32
    %261 = vector.shape_cast %260 : vector<1x1x128xi1> to vector<1x1x128xi1>
    %262 = vector.broadcast %261 : vector<1x1x128xi1> to vector<2x16x128xi1>
    %263 = vector.broadcast %cst_111 : f32 to vector<2x16x128xf32>
    %264 = arith.select %262, %258, %263 : vector<2x16x128xi1>, vector<2x16x128xf32>
    %c22 = arith.constant 22 : index
    %c0_112 = arith.constant 0 : index
    %c0_113 = arith.constant 0 : index
    %c0_114 = arith.constant 0 : index
    %265 = vector.load %arg1[%c22, %c0_112, %c0_113, %c0_114] : memref<31x1x16x128xf32, #tpu.memory_space<vmem>>, vector<1x1x16x128xf32>
    %266 = vector.shape_cast %265 : vector<1x1x16x128xf32> to vector<1x16x128xf32>
    %267 = vector.broadcast %266 : vector<1x16x128xf32> to vector<2x16x128xf32>
    %268 = arith.mulf %264, %267 : vector<2x16x128xf32>
    %269 = arith.addf %257, %268 : vector<2x16x128xf32>
    %c120_i32 = arith.constant 120 : i32
    %270 = tpu.dynamic_rotate %0 by %c120_i32 dim 2 : vector<2x16x128xf32>, i32 -> vector<2x16x128xf32>
    %c120_i32_115 = arith.constant 120 : i32
    %271 = vector.broadcast %c120_i32_115 : i32 to vector<1x1x128xi32>
    %272 = arith.cmpi slt, %1, %271 : vector<1x1x128xi32>
    %cst_116 = arith.constant 0.000000e+00 : f32
    %273 = vector.shape_cast %272 : vector<1x1x128xi1> to vector<1x1x128xi1>
    %274 = vector.broadcast %273 : vector<1x1x128xi1> to vector<2x16x128xi1>
    %275 = vector.broadcast %cst_116 : f32 to vector<2x16x128xf32>
    %276 = arith.select %274, %270, %275 : vector<2x16x128xi1>, vector<2x16x128xf32>
    %c23 = arith.constant 23 : index
    %c0_117 = arith.constant 0 : index
    %c0_118 = arith.constant 0 : index
    %c0_119 = arith.constant 0 : index
    %277 = vector.load %arg1[%c23, %c0_117, %c0_118, %c0_119] : memref<31x1x16x128xf32, #tpu.memory_space<vmem>>, vector<1x1x16x128xf32>
    %278 = vector.shape_cast %277 : vector<1x1x16x128xf32> to vector<1x16x128xf32>
    %279 = vector.broadcast %278 : vector<1x16x128xf32> to vector<2x16x128xf32>
    %280 = arith.mulf %276, %279 : vector<2x16x128xf32>
    %281 = arith.addf %269, %280 : vector<2x16x128xf32>
    %c119_i32 = arith.constant 119 : i32
    %282 = tpu.dynamic_rotate %0 by %c119_i32 dim 2 : vector<2x16x128xf32>, i32 -> vector<2x16x128xf32>
    %c119_i32_120 = arith.constant 119 : i32
    %283 = vector.broadcast %c119_i32_120 : i32 to vector<1x1x128xi32>
    %284 = arith.cmpi slt, %1, %283 : vector<1x1x128xi32>
    %cst_121 = arith.constant 0.000000e+00 : f32
    %285 = vector.shape_cast %284 : vector<1x1x128xi1> to vector<1x1x128xi1>
    %286 = vector.broadcast %285 : vector<1x1x128xi1> to vector<2x16x128xi1>
    %287 = vector.broadcast %cst_121 : f32 to vector<2x16x128xf32>
    %288 = arith.select %286, %282, %287 : vector<2x16x128xi1>, vector<2x16x128xf32>
    %c24 = arith.constant 24 : index
    %c0_122 = arith.constant 0 : index
    %c0_123 = arith.constant 0 : index
    %c0_124 = arith.constant 0 : index
    %289 = vector.load %arg1[%c24, %c0_122, %c0_123, %c0_124] : memref<31x1x16x128xf32, #tpu.memory_space<vmem>>, vector<1x1x16x128xf32>
    %290 = vector.shape_cast %289 : vector<1x1x16x128xf32> to vector<1x16x128xf32>
    %291 = vector.broadcast %290 : vector<1x16x128xf32> to vector<2x16x128xf32>
    %292 = arith.mulf %288, %291 : vector<2x16x128xf32>
    %293 = arith.addf %281, %292 : vector<2x16x128xf32>
    %c118_i32 = arith.constant 118 : i32
    %294 = tpu.dynamic_rotate %0 by %c118_i32 dim 2 : vector<2x16x128xf32>, i32 -> vector<2x16x128xf32>
    %c118_i32_125 = arith.constant 118 : i32
    %295 = vector.broadcast %c118_i32_125 : i32 to vector<1x1x128xi32>
    %296 = arith.cmpi slt, %1, %295 : vector<1x1x128xi32>
    %cst_126 = arith.constant 0.000000e+00 : f32
    %297 = vector.shape_cast %296 : vector<1x1x128xi1> to vector<1x1x128xi1>
    %298 = vector.broadcast %297 : vector<1x1x128xi1> to vector<2x16x128xi1>
    %299 = vector.broadcast %cst_126 : f32 to vector<2x16x128xf32>
    %300 = arith.select %298, %294, %299 : vector<2x16x128xi1>, vector<2x16x128xf32>
    %c25 = arith.constant 25 : index
    %c0_127 = arith.constant 0 : index
    %c0_128 = arith.constant 0 : index
    %c0_129 = arith.constant 0 : index
    %301 = vector.load %arg1[%c25, %c0_127, %c0_128, %c0_129] : memref<31x1x16x128xf32, #tpu.memory_space<vmem>>, vector<1x1x16x128xf32>
    %302 = vector.shape_cast %301 : vector<1x1x16x128xf32> to vector<1x16x128xf32>
    %303 = vector.broadcast %302 : vector<1x16x128xf32> to vector<2x16x128xf32>
    %304 = arith.mulf %300, %303 : vector<2x16x128xf32>
    %305 = arith.addf %293, %304 : vector<2x16x128xf32>
    %c117_i32 = arith.constant 117 : i32
    %306 = tpu.dynamic_rotate %0 by %c117_i32 dim 2 : vector<2x16x128xf32>, i32 -> vector<2x16x128xf32>
    %c117_i32_130 = arith.constant 117 : i32
    %307 = vector.broadcast %c117_i32_130 : i32 to vector<1x1x128xi32>
    %308 = arith.cmpi slt, %1, %307 : vector<1x1x128xi32>
    %cst_131 = arith.constant 0.000000e+00 : f32
    %309 = vector.shape_cast %308 : vector<1x1x128xi1> to vector<1x1x128xi1>
    %310 = vector.broadcast %309 : vector<1x1x128xi1> to vector<2x16x128xi1>
    %311 = vector.broadcast %cst_131 : f32 to vector<2x16x128xf32>
    %312 = arith.select %310, %306, %311 : vector<2x16x128xi1>, vector<2x16x128xf32>
    %c26 = arith.constant 26 : index
    %c0_132 = arith.constant 0 : index
    %c0_133 = arith.constant 0 : index
    %c0_134 = arith.constant 0 : index
    %313 = vector.load %arg1[%c26, %c0_132, %c0_133, %c0_134] : memref<31x1x16x128xf32, #tpu.memory_space<vmem>>, vector<1x1x16x128xf32>
    %314 = vector.shape_cast %313 : vector<1x1x16x128xf32> to vector<1x16x128xf32>
    %315 = vector.broadcast %314 : vector<1x16x128xf32> to vector<2x16x128xf32>
    %316 = arith.mulf %312, %315 : vector<2x16x128xf32>
    %317 = arith.addf %305, %316 : vector<2x16x128xf32>
    %c116_i32 = arith.constant 116 : i32
    %318 = tpu.dynamic_rotate %0 by %c116_i32 dim 2 : vector<2x16x128xf32>, i32 -> vector<2x16x128xf32>
    %c116_i32_135 = arith.constant 116 : i32
    %319 = vector.broadcast %c116_i32_135 : i32 to vector<1x1x128xi32>
    %320 = arith.cmpi slt, %1, %319 : vector<1x1x128xi32>
    %cst_136 = arith.constant 0.000000e+00 : f32
    %321 = vector.shape_cast %320 : vector<1x1x128xi1> to vector<1x1x128xi1>
    %322 = vector.broadcast %321 : vector<1x1x128xi1> to vector<2x16x128xi1>
    %323 = vector.broadcast %cst_136 : f32 to vector<2x16x128xf32>
    %324 = arith.select %322, %318, %323 : vector<2x16x128xi1>, vector<2x16x128xf32>
    %c27 = arith.constant 27 : index
    %c0_137 = arith.constant 0 : index
    %c0_138 = arith.constant 0 : index
    %c0_139 = arith.constant 0 : index
    %325 = vector.load %arg1[%c27, %c0_137, %c0_138, %c0_139] : memref<31x1x16x128xf32, #tpu.memory_space<vmem>>, vector<1x1x16x128xf32>
    %326 = vector.shape_cast %325 : vector<1x1x16x128xf32> to vector<1x16x128xf32>
    %327 = vector.broadcast %326 : vector<1x16x128xf32> to vector<2x16x128xf32>
    %328 = arith.mulf %324, %327 : vector<2x16x128xf32>
    %329 = arith.addf %317, %328 : vector<2x16x128xf32>
    %c115_i32 = arith.constant 115 : i32
    %330 = tpu.dynamic_rotate %0 by %c115_i32 dim 2 : vector<2x16x128xf32>, i32 -> vector<2x16x128xf32>
    %c115_i32_140 = arith.constant 115 : i32
    %331 = vector.broadcast %c115_i32_140 : i32 to vector<1x1x128xi32>
    %332 = arith.cmpi slt, %1, %331 : vector<1x1x128xi32>
    %cst_141 = arith.constant 0.000000e+00 : f32
    %333 = vector.shape_cast %332 : vector<1x1x128xi1> to vector<1x1x128xi1>
    %334 = vector.broadcast %333 : vector<1x1x128xi1> to vector<2x16x128xi1>
    %335 = vector.broadcast %cst_141 : f32 to vector<2x16x128xf32>
    %336 = arith.select %334, %330, %335 : vector<2x16x128xi1>, vector<2x16x128xf32>
    %c28 = arith.constant 28 : index
    %c0_142 = arith.constant 0 : index
    %c0_143 = arith.constant 0 : index
    %c0_144 = arith.constant 0 : index
    %337 = vector.load %arg1[%c28, %c0_142, %c0_143, %c0_144] : memref<31x1x16x128xf32, #tpu.memory_space<vmem>>, vector<1x1x16x128xf32>
    %338 = vector.shape_cast %337 : vector<1x1x16x128xf32> to vector<1x16x128xf32>
    %339 = vector.broadcast %338 : vector<1x16x128xf32> to vector<2x16x128xf32>
    %340 = arith.mulf %336, %339 : vector<2x16x128xf32>
    %341 = arith.addf %329, %340 : vector<2x16x128xf32>
    %c114_i32 = arith.constant 114 : i32
    %342 = tpu.dynamic_rotate %0 by %c114_i32 dim 2 : vector<2x16x128xf32>, i32 -> vector<2x16x128xf32>
    %c114_i32_145 = arith.constant 114 : i32
    %343 = vector.broadcast %c114_i32_145 : i32 to vector<1x1x128xi32>
    %344 = arith.cmpi slt, %1, %343 : vector<1x1x128xi32>
    %cst_146 = arith.constant 0.000000e+00 : f32
    %345 = vector.shape_cast %344 : vector<1x1x128xi1> to vector<1x1x128xi1>
    %346 = vector.broadcast %345 : vector<1x1x128xi1> to vector<2x16x128xi1>
    %347 = vector.broadcast %cst_146 : f32 to vector<2x16x128xf32>
    %348 = arith.select %346, %342, %347 : vector<2x16x128xi1>, vector<2x16x128xf32>
    %c29 = arith.constant 29 : index
    %c0_147 = arith.constant 0 : index
    %c0_148 = arith.constant 0 : index
    %c0_149 = arith.constant 0 : index
    %349 = vector.load %arg1[%c29, %c0_147, %c0_148, %c0_149] : memref<31x1x16x128xf32, #tpu.memory_space<vmem>>, vector<1x1x16x128xf32>
    %350 = vector.shape_cast %349 : vector<1x1x16x128xf32> to vector<1x16x128xf32>
    %351 = vector.broadcast %350 : vector<1x16x128xf32> to vector<2x16x128xf32>
    %352 = arith.mulf %348, %351 : vector<2x16x128xf32>
    %353 = arith.addf %341, %352 : vector<2x16x128xf32>
    %c113_i32 = arith.constant 113 : i32
    %354 = tpu.dynamic_rotate %0 by %c113_i32 dim 2 : vector<2x16x128xf32>, i32 -> vector<2x16x128xf32>
    %c113_i32_150 = arith.constant 113 : i32
    %355 = vector.broadcast %c113_i32_150 : i32 to vector<1x1x128xi32>
    %356 = arith.cmpi slt, %1, %355 : vector<1x1x128xi32>
    %cst_151 = arith.constant 0.000000e+00 : f32
    %357 = vector.shape_cast %356 : vector<1x1x128xi1> to vector<1x1x128xi1>
    %358 = vector.broadcast %357 : vector<1x1x128xi1> to vector<2x16x128xi1>
    %359 = vector.broadcast %cst_151 : f32 to vector<2x16x128xf32>
    %360 = arith.select %358, %354, %359 : vector<2x16x128xi1>, vector<2x16x128xf32>
    %c30 = arith.constant 30 : index
    %c0_152 = arith.constant 0 : index
    %c0_153 = arith.constant 0 : index
    %c0_154 = arith.constant 0 : index
    %361 = vector.load %arg1[%c30, %c0_152, %c0_153, %c0_154] : memref<31x1x16x128xf32, #tpu.memory_space<vmem>>, vector<1x1x16x128xf32>
    %362 = vector.shape_cast %361 : vector<1x1x16x128xf32> to vector<1x16x128xf32>
    %363 = vector.broadcast %362 : vector<1x16x128xf32> to vector<2x16x128xf32>
    %364 = arith.mulf %360, %363 : vector<2x16x128xf32>
    %365 = arith.addf %353, %364 : vector<2x16x128xf32>
    %c0_155 = arith.constant 0 : index
    %366 = memref.load %arg2[%c0_155] : memref<1xf32, #tpu.memory_space<smem>>
    %cst_156 = arith.constant 0.000000e+00 : f32
    %367 = vector.broadcast %cst_156 : f32 to vector<2x16x128xf32>
    %368 = arith.cmpf ogt, %365, %367 : vector<2x16x128xf32>
    %369 = vector.broadcast %366 : f32 to vector<2x16x128xf32>
    %370 = arith.mulf %369, %365 : vector<2x16x128xf32>
    %371 = arith.select %368, %365, %370 : vector<2x16x128xi1>, vector<2x16x128xf32>
    %cst_157 = arith.constant dense<0.000000e+00> : vector<16xf32>
    %372 = vector.multi_reduction <add>, %371, %cst_157 [0, 2] : vector<2x16x128xf32> to vector<16xf32>
    %373 = vector.shape_cast %372 : vector<16xf32> to vector<1x16x1xf32>
    %374 = arith.mulf %371, %371 : vector<2x16x128xf32>
    %cst_158 = arith.constant dense<0.000000e+00> : vector<16xf32>
    %375 = vector.multi_reduction <add>, %374, %cst_158 [0, 2] : vector<2x16x128xf32> to vector<16xf32>
    %376 = vector.shape_cast %375 : vector<16xf32> to vector<1x16x1xf32>
    %cst_159 = arith.constant 3.906250e-03 : f32
    %377 = vector.broadcast %cst_159 : f32 to vector<1x16x1xf32>
    %378 = arith.mulf %373, %377 : vector<1x16x1xf32>
    %cst_160 = arith.constant 3.906250e-03 : f32
    %379 = vector.broadcast %cst_160 : f32 to vector<1x16x1xf32>
    %380 = arith.mulf %376, %379 : vector<1x16x1xf32>
    %381 = arith.mulf %378, %378 : vector<1x16x1xf32>
    %382 = arith.subf %380, %381 : vector<1x16x1xf32>
    %cst_161 = arith.constant 9.99999974E-6 : f32
    %383 = vector.broadcast %cst_161 : f32 to vector<1x16x1xf32>
    %384 = arith.addf %382, %383 : vector<1x16x1xf32>
    %385 = math.rsqrt %384 : vector<1x16x1xf32>
    %c0_162 = arith.constant 0 : index
    %c0_163 = arith.constant 0 : index
    %c0_164 = arith.constant 0 : index
    %386 = vector.load %arg3[%c0_162, %c0_163, %c0_164] : memref<2x16x1xf32, #tpu.memory_space<vmem>>, vector<1x16x1xf32>
    %387 = vector.shape_cast %386 : vector<1x16x1xf32> to vector<16x1xf32>
    %388 = vector.shape_cast %387 : vector<16x1xf32> to vector<1x16x1xf32>
    %389 = arith.mulf %388, %385 : vector<1x16x1xf32>
    %c1_165 = arith.constant 1 : index
    %c0_166 = arith.constant 0 : index
    %c0_167 = arith.constant 0 : index
    %390 = vector.load %arg3[%c1_165, %c0_166, %c0_167] : memref<2x16x1xf32, #tpu.memory_space<vmem>>, vector<1x16x1xf32>
    %391 = vector.shape_cast %390 : vector<1x16x1xf32> to vector<16x1xf32>
    %392 = arith.mulf %378, %389 : vector<1x16x1xf32>
    %393 = vector.shape_cast %391 : vector<16x1xf32> to vector<1x16x1xf32>
    %394 = arith.subf %393, %392 : vector<1x16x1xf32>
    %395 = vector.broadcast %389 : vector<1x16x1xf32> to vector<2x16x128xf32>
    %396 = arith.mulf %371, %395 : vector<2x16x128xf32>
    %397 = vector.broadcast %394 : vector<1x16x1xf32> to vector<2x16x128xf32>
    %398 = arith.addf %396, %397 : vector<2x16x128xf32>
    %c0_168 = arith.constant 0 : index
    %c0_169 = arith.constant 0 : index
    %c0_170 = arith.constant 0 : index
    %399 = vector.load %arg4[%c0_168, %c0_169, %c0_170] : memref<2x16x128xf32, #tpu.memory_space<vmem>>, vector<2x16x128xf32>
    tpu.vector_store %arg4[%c0_168, %c0_169, %c0_170], %398 {strides = array<i32>} : memref<2x16x128xf32, #tpu.memory_space<vmem>>, vector<2x16x128xf32>,
    return
  }
}

</mosaic_0001>

<bundles_post_ra>
// kernel: tpu_custom_call.1
= control target key start
LH: loop header
LB: loop body
LE: loop exit
PB: predicated region body
PF: predicated region fallthrough
CT: control target
= control target key end

     0   :  { %10 = vsyncpa [#allocation4], 0  ;;  %s1613_s0 = inlined_call_operand.vmem [shape: f32[2,16,128], index: 0, kind: input, shape index: {}]   ;;  %s1614_s1 = inlined_call_operand.hbm [shape: f32[31,1,16,128], index: 1, kind: input, shape index: {}]   ;;  %s1615_s2 = inlined_call_operand.<no memory space> [shape: f32[1], index: 2, kind: input, shape index: {}]   ;;  %s1616_s3 = inlined_call_operand.vmem [shape: f32[2,16,1], index: 3, kind: input, shape index: {}]   ;;  %s1617_s4 = inlined_call_operand.hbm [shape: f32[2,16,128], index: 4, kind: output, shape index: {}]  }
   0x1   :  { %11 = vsyncpa [#allocation5], 0  ;;  %s18_s17 = sshll.u32 %s1614_s1, 4  ;;  %s1047_s18 = smov [#allocation3]   ;;  %s19_s17 = int_to_ptr.hbm [resolvable:$true] %s18_s17 }
   0x2   :  { %s20_s19 = sshll.u32 %s1047_s18, 4  ;;  %s1048_s20 = smov 128   ;;  %s21_s19 = int_to_ptr.vmem [resolvable:$true] %s20_s19 }
   0x3   :  { %s1049_s21 = smov 8  }
   0x4   :  { %26 = dma.hbm_to_vmem [thread:$0]  %s19_s17, 7936, %s21_s19, [#allocation4], %s1048_s20, %s1048_s20, %s1049_s21  }
   0x5   :  { %1043 = dma.done.wait [#allocation4], 7936  }
   0x6   :  { %1044 = vsyncadd [#allocation4], 4294959360  ;;  %v1115_v0 = vld [vmem:[%s1613_s0 + $0x10] sm:$0xff]  ;;  %v1120_v1 = vld [vmem:[%s1613_s0] sm:$0xff]  ;;  %s1050_s1 = smov 15   ;;  %s1051_s26 = smov 14   ;;  %v39_v6 = vlaneseq }
   0x7   :  { %52 = vrot.lane.b32.xlu1 %v1115_v0, %s1050_s1  ;;  %48 = vrot.lane.b32.xlu0 %v1120_v1, %s1050_s1  ;;  %v1128_v2 = vld [vmem:[%s1613_s0 + $0x18] sm:$0xff]  ;;  %v1133_v3 = vld [vmem:[%s1613_s0 + $0x8] sm:$0xff]  ;;  %s1052_s5 = smov 13   ;;  %s1053_s6 = smov 12   ;;  %v89_v9 = vld [vmem:[#allocation3 + $0x10] sm:$0xff] }
   0x8   :  { %73 = vrot.lane.b32.xlu2 %v1120_v1, %s1051_s26  ;;  %s1054_s7 = smov 11   ;;  %s1055_s8 = smov 10   ;;  %v1178_v8 = vand.u32 127, %v39_v6  ;;  %v42_v11 = vld [vmem:[#allocation3 + $0xf0] sm:$0xff]  ;;  %v63_v15 = vld [vmem:[#allocation3] sm:$0xff]  ;;  %v90_v25 = vld [vmem:[#allocation3 + $0x18] sm:$0xff] }
   0x9   :  { %s1056_s9 = smov 9   ;;  %s1057_s10 = smov 7   ;;  %v44_v14 = vmul.f32 %v42_v11, %v1120_v1  ;;  %v115_v17 = vld [vmem:[#allocation3 + $0x20] sm:$0xff]  ;;  %v43_v27 = vld [vmem:[#allocation3 + $0xf8] sm:$0xff]  ;;  %v64_v32 = vld [vmem:[#allocation3 + $0x8] sm:$0xff]  ;;  %v46_v40 = vmul.f32 %v42_v11, %v1115_v0 }
   0xa   :  { %s1058_s11 = smov 6   ;;  %s1059_s12 = smov 5   ;;  %vm81_vm0 = vcmp.ge.s32.totalorder %v1178_v8, 14  ;;  %vm107_vm1 = vcmp.ge.s32.totalorder %v1178_v8, 13  ;;  %vm56_vm2 = vcmp.ge.s32.totalorder %v1178_v8, 15  ;;  %v45_v29 = vmul.f32 %v43_v27, %v1133_v3  ;;  %v116_v44 = vld [vmem:[#allocation3 + $0x28] sm:$0xff] }
   0xb   :  { %s1060_s13 = smov 4   ;;  %v47_v41 = vmul.f32 %v43_v27, %v1128_v2  ;;  %s1061_s14 = smov 3   ;;  %vm133_vm3 = vcmp.ge.s32.totalorder %v1178_v8, 12  ;;  %v141_v60 = vld [vmem:[#allocation3 + $0x30] sm:$0xff]  ;;  %vm159_vm4 = vcmp.ge.s32.totalorder %v1178_v8, 11  ;;  %vm185_vm5 = vcmp.ge.s32.totalorder %v1178_v8, 10 }
   0xc   :  { %s1062_s15 = smov 2   ;;  %s1063_s16 = smov 1   ;;  %vm211_vm6 = vcmp.ge.s32.totalorder %v1178_v8, 9  ;;  %vm237_vm7 = vcmp.ge.s32.totalorder %v1178_v8, 8  ;;  %vm263_vm8 = vcmp.ge.s32.totalorder %v1178_v8, 7  ;;  %vm289_vm9 = vcmp.ge.s32.totalorder %v1178_v8, 6 }
   0xd   :  { %s1064_s17 = smov 127   ;;  %s1065_s18 = smov 126   ;;  %vm315_vm10 = vcmp.ge.s32.totalorder %v1178_v8, 5  ;;  %vm341_vm11 = vcmp.ge.s32.totalorder %v1178_v8, 4  ;;  %vm367_vm12 = vcmp.ge.s32.totalorder %v1178_v8, 3  ;;  %vm393_vm13 = vcmp.ge.s32.totalorder %v1178_v8, 2 }
   0xe   :  { %s1066_s19 = smov 125   ;;  %s1067_s22 = smov 124   ;;  %vm419_vm14 = vcmp.ge.s32.totalorder %v1178_v8, 1  ;;  %vm445_vm15 = vcmp.lt.s32.totalorder %v1178_v8, 127 }
   0xf   :  { %54 = vrot.lane.b32.xlu1 %v1128_v2, %s1050_s1  ;;  %50 = vrot.lane.b32.xlu0 %v1133_v3, %s1050_s1  ;;  %s1068_s23 = smov 123   ;;  %s1069_s24 = smov 122  }
  0x10   :  { %75 = vrot.lane.b32.xlu2 %v1133_v3, %s1051_s26  ;;  %s1070_s25 = smov 121   ;;  %s1071_s1 = smov 120  }
  0x11   :  { %s1073_s27 = smov 118   ;;  %s1074_s28 = smov 117  }
  0x12   :  { %s1075_s29 = smov 116   ;;  %s1076_s30 = smov 115  }
  0x17   :  { %79 = vrot.lane.b32.xlu1 %v1128_v2, %s1051_s26  ;;  %77 = vrot.lane.b32.xlu0 %v1115_v0, %s1051_s26  ;;  %s1072_s26 = smov 119  }
  0x18   :  { %99 = vrot.lane.b32.xlu2 %v1120_v1, %s1052_s5 }
  0x1f   :  { %103 = vrot.lane.b32.xlu1 %v1115_v0, %s1052_s5  ;;  %101 = vrot.lane.b32.xlu0 %v1133_v3, %s1052_s5 }
  0x20   :  { %105 = vrot.lane.b32.xlu2 %v1128_v2, %s1052_s5  ;;  %s1077_s5 = smov 114  }
  0x27   :  { %127 = vrot.lane.b32.xlu1 %v1133_v3, %s1053_s6  ;;  %125 = vrot.lane.b32.xlu0 %v1120_v1, %s1053_s6 }
  0x28   :  { %129 = vrot.lane.b32.xlu2 %v1115_v0, %s1053_s6 }
  0x2f   :  { %151 = vrot.lane.b32.xlu1 %v1120_v1, %s1054_s7  ;;  %131 = vrot.lane.b32.xlu0 %v1128_v2, %s1053_s6  ;;  %s1078_s6 = smov 113  }
  0x30   :  { %153 = vrot.lane.b32.xlu2 %v1133_v3, %s1054_s7 }
  0x37   :  { %157 = vrot.lane.b32.xlu1 %v1128_v2, %s1054_s7  ;;  %155 = vrot.lane.b32.xlu0 %v1115_v0, %s1054_s7 }
  0x38   :  { %177 = vrot.lane.b32.xlu2 %v1120_v1, %s1055_s8 }
  0x3f   :  { %181 = vrot.lane.b32.xlu1 %v1115_v0, %s1055_s8  ;;  %179 = vrot.lane.b32.xlu0 %v1133_v3, %s1055_s8 }
  0x40   :  { %183 = vrot.lane.b32.xlu2 %v1128_v2, %s1055_s8 }
  0x47   :  { %205 = vrot.lane.b32.xlu1 %v1133_v3, %s1056_s9  ;;  %203 = vrot.lane.b32.xlu0 %v1120_v1, %s1056_s9 }
  0x48   :  { %207 = vrot.lane.b32.xlu2 %v1115_v0, %s1056_s9 }
  0x4f   :  { %229 = vrot.lane.b32.xlu1 %v1120_v1, %s1049_s21  ;;  %209 = vrot.lane.b32.xlu0 %v1128_v2, %s1056_s9 }
  0x50   :  { %231 = vrot.lane.b32.xlu2 %v1133_v3, %s1049_s21 }
  0x57   :  { %235 = vrot.lane.b32.xlu1 %v1128_v2, %s1049_s21  ;;  %233 = vrot.lane.b32.xlu0 %v1115_v0, %s1049_s21 }
  0x58   :  { %255 = vrot.lane.b32.xlu2 %v1120_v1, %s1057_s10 }
  0x5f   :  { %259 = vrot.lane.b32.xlu1 %v1115_v0, %s1057_s10  ;;  %257 = vrot.lane.b32.xlu0 %v1133_v3, %s1057_s10 }
  0x60   :  { %261 = vrot.lane.b32.xlu2 %v1128_v2, %s1057_s10 }
  0x62   :  { %v74_v4 = vpop.permute.xlu2 %73 }
  0x63   :  { %v84_v10 = vsel %vm81_vm0, %v74_v4, 0.0 }
  0x64   :  { %v91_v20 = vmul.f32 %v89_v9, %v84_v10 }
  0x67   :  { %283 = vrot.lane.b32.xlu1 %v1133_v3, %s1058_s11  ;;  %281 = vrot.lane.b32.xlu0 %v1120_v1, %s1058_s11 }
  0x68   :  { %285 = vrot.lane.b32.xlu2 %v1115_v0, %s1058_s11 }
  0x6a   :  { %v76_v5 = vpop.permute.xlu2 %75 }
  0x6b   :  { %v85_v26 = vsel %vm81_vm0, %v76_v5, 0.0 }
  0x6c   :  { %v92_v35 = vmul.f32 %v90_v25, %v85_v26 }
  0x6f   :  { %307 = vrot.lane.b32.xlu1 %v1120_v1, %s1059_s12  ;;  %287 = vrot.lane.b32.xlu0 %v1128_v2, %s1058_s11 }
  0x70   :  { %309 = vrot.lane.b32.xlu2 %v1133_v3, %s1059_s12 }
  0x72   :  { %v100_v7 = vpop.permute.xlu2 %99 }
  0x73   :  { %v110_v18 = vsel %vm107_vm1, %v100_v7, 0.0 }
  0x74   :  { %v117_v23 = vmul.f32 %v115_v17, %v110_v18 }
  0x77   :  { %313 = vrot.lane.b32.xlu1 %v1128_v2, %s1059_s12  ;;  %311 = vrot.lane.b32.xlu0 %v1115_v0, %s1059_s12 }
  0x78   :  { %333 = vrot.lane.b32.xlu2 %v1120_v1, %s1060_s13 }
  0x79   :  { %v53_v12 = vpop.permute.xlu1 %52  ;;  %v49_v13 = vpop.permute.xlu0 %48 }
  0x7a   :  { %v59_v16 = vsel %vm56_vm2, %v49_v13, 0.0  ;;  %v106_v19 = vpop.permute.xlu2 %105  ;;  %v61_v37 = vsel %vm56_vm2, %v53_v12, 0.0 }
  0x7b   :  { %v65_v21 = vmul.f32 %v63_v15, %v59_v16  ;;  %v67_v42 = vmul.f32 %v63_v15, %v61_v37  ;;  %v113_v45 = vsel %vm107_vm1, %v106_v19, 0.0  ;;  %v168_v15 = vld [vmem:[#allocation3 + $0x48] sm:$0xff] }
  0x7c   :  { %v120_v51 = vmul.f32 %v116_v44, %v113_v45 }
  0x7d   :  { %v69_v22 = vadd.f32 %v65_v21, %v44_v14  ;;  %v71_v53 = vadd.f32 %v67_v42, %v46_v40  ;;  %v142_v14 = vld [vmem:[#allocation3 + $0x38] sm:$0xff] }
  0x7e   :  { %v194_v42 = vld [vmem:[#allocation3 + $0x58] sm:$0xff] }
  0x7f   :  { %337 = vrot.lane.b32.xlu1 %v1115_v0, %s1060_s13  ;;  %335 = vrot.lane.b32.xlu0 %v1133_v3, %s1060_s13  ;;  %v95_v24 = vadd.f32 %v91_v20, %v69_v22 }
  0x80   :  { %339 = vrot.lane.b32.xlu2 %v1128_v2, %s1060_s13 }
  0x81   :  { %v55_v28 = vpop.permute.xlu1 %54  ;;  %v51_v30 = vpop.permute.xlu0 %50  ;;  %v1199_v31 = vadd.f32 %v117_v23, %v95_v24 }
  0x82   :  { %v60_v33 = vsel %vm56_vm2, %v51_v30, 0.0  ;;  %v130_v34 = vpop.permute.xlu2 %129  ;;  %v62_v38 = vsel %vm56_vm2, %v55_v28, 0.0  ;;  %v167_v28 = vld [vmem:[#allocation3 + $0x40] sm:$0xff]  ;;  %vm523_vm2 = vcmp.lt.s32.totalorder %v1178_v8, 124 }
  0x83   :  { %v66_v36 = vmul.f32 %v64_v32, %v60_v33  ;;  %v68_v43 = vmul.f32 %v64_v32, %v62_v38  ;;  %v138_v61 = vsel %vm133_vm3, %v130_v34, 0.0 }
  0x84   :  { %v145_v10 = vmul.f32 %v141_v60, %v138_v61 }
  0x85   :  { %v70_v39 = vadd.f32 %v66_v36, %v45_v29  ;;  %v72_v54 = vadd.f32 %v68_v43, %v47_v41  ;;  %v193_v29 = vld [vmem:[#allocation3 + $0x50] sm:$0xff] }
  0x87   :  { %361 = vrot.lane.b32.xlu1 %v1133_v3, %s1061_s14  ;;  %359 = vrot.lane.b32.xlu0 %v1120_v1, %s1061_s14  ;;  %v96_v46 = vadd.f32 %v92_v35, %v70_v39 }
  0x88   :  { %363 = vrot.lane.b32.xlu2 %v1115_v0, %s1061_s14 }
  0x89   :  { %v80_v47 = vpop.permute.xlu1 %79  ;;  %v78_v48 = vpop.permute.xlu0 %77 }
  0x8a   :  { %v87_v49 = vsel %vm81_vm0, %v80_v47, 0.0  ;;  %v86_v50 = vsel %vm81_vm0, %v78_v48, 0.0  ;;  %v154_v52 = vpop.permute.xlu2 %153  ;;  %vm471_vm0 = vcmp.lt.s32.totalorder %v1178_v8, 126 }
  0x8b   :  { %v94_v55 = vmul.f32 %v90_v25, %v87_v49  ;;  %v93_v56 = vmul.f32 %v89_v9, %v86_v50  ;;  %v163_v16 = vsel %vm159_vm4, %v154_v52, 0.0 }
  0x8c   :  { %v170_v24 = vmul.f32 %v168_v15, %v163_v16 }
  0x8d   :  { %v98_v57 = vadd.f32 %v94_v55, %v72_v54  ;;  %v97_v58 = vadd.f32 %v93_v56, %v71_v53  ;;  %v219_v55 = vld [vmem:[#allocation3 + $0x60] sm:$0xff] }
  0x8f   :  { %v124_v59 = vadd.f32 %v120_v51, %v98_v57  ;;  %385 = vrot.lane.b32.xlu1 %v1120_v1, %s1062_s15  ;;  %365 = vrot.lane.b32.xlu0 %v1128_v2, %s1061_s14 }
  0x90   :  { %387 = vrot.lane.b32.xlu2 %v1133_v3, %s1062_s15 }
  0x91   :  { %v104_v62 = vpop.permute.xlu1 %103  ;;  %v102_v63 = vpop.permute.xlu0 %101 }
  0x92   :  { %v112_v4 = vsel %vm107_vm1, %v104_v62, 0.0  ;;  %v111_v5 = vsel %vm107_vm1, %v102_v63, 0.0  ;;  %v178_v6 = vpop.permute.xlu2 %177  ;;  %vm497_vm1 = vcmp.lt.s32.totalorder %v1178_v8, 125 }
  0x93   :  { %v119_v7 = vmul.f32 %v115_v17, %v112_v4  ;;  %v118_v9 = vmul.f32 %v116_v44, %v111_v5  ;;  %v188_v30 = vsel %vm185_vm5, %v178_v6, 0.0 }
  0x94   :  { %v195_v38 = vmul.f32 %v193_v29, %v188_v30 }
  0x95   :  { %v123_v11 = vadd.f32 %v119_v7, %v97_v58  ;;  %v122_v12 = vadd.f32 %v118_v9, %v96_v46  ;;  %v220_v9 = vld [vmem:[#allocation3 + $0x68] sm:$0xff] }
  0x97   :  { %v149_v13 = vadd.f32 %v145_v10, %v123_v11  ;;  %391 = vrot.lane.b32.xlu1 %v1128_v2, %s1062_s15  ;;  %389 = vrot.lane.b32.xlu0 %v1115_v0, %s1062_s15  ;;  %v246_v10 = vld [vmem:[#allocation3 + $0x78] sm:$0xff] }
  0x98   :  { %411 = vrot.lane.b32.xlu2 %v1120_v1, %s1063_s16 }
  0x99   :  { %v128_v17 = vpop.permute.xlu1 %127  ;;  %v126_v18 = vpop.permute.xlu0 %125 }
  0x9a   :  { %v137_v19 = vsel %vm133_vm3, %v128_v17, 0.0  ;;  %v136_v20 = vsel %vm133_vm3, %v126_v18, 0.0  ;;  %v184_v21 = vpop.permute.xlu2 %183 }
  0x9b   :  { %v144_v22 = vmul.f32 %v142_v14, %v137_v19  ;;  %v143_v23 = vmul.f32 %v141_v60, %v136_v20  ;;  %v191_v43 = vsel %vm185_vm5, %v184_v21, 0.0 }
  0x9c   :  { %v198_v51 = vmul.f32 %v194_v42, %v191_v43 }
  0x9d   :  { %v148_v25 = vadd.f32 %v144_v22, %v122_v12  ;;  %v147_v26 = vadd.f32 %v143_v23, %v1199_v31  ;;  %v245_v23 = vld [vmem:[#allocation3 + $0x70] sm:$0xff] }
  0x9f   :  { %v174_v27 = vadd.f32 %v170_v24, %v148_v25  ;;  %415 = vrot.lane.b32.xlu1 %v1115_v0, %s1063_s16  ;;  %413 = vrot.lane.b32.xlu0 %v1133_v3, %s1063_s16  ;;  %v271_v24 = vld [vmem:[#allocation3 + $0x80] sm:$0xff] }
  0xa0   :  { %417 = vrot.lane.b32.xlu2 %v1128_v2, %s1063_s16 }
  0xa1   :  { %v152_v32 = vpop.permute.xlu1 %151  ;;  %v132_v33 = vpop.permute.xlu0 %131 }
  0xa2   :  { %v162_v34 = vsel %vm159_vm4, %v152_v32, 0.0  ;;  %v139_v31 = vsel %vm133_vm3, %v132_v33, 0.0  ;;  %v208_v35 = vpop.permute.xlu2 %207  ;;  %vm549_vm3 = vcmp.lt.s32.totalorder %v1178_v8, 123 }
  0xa3   :  { %v169_v36 = vmul.f32 %v167_v28, %v162_v34  ;;  %v146_v37 = vmul.f32 %v142_v14, %v139_v31  ;;  %v216_v56 = vsel %vm211_vm6, %v208_v35, 0.0 }
  0xa4   :  { %v223_v4 = vmul.f32 %v219_v55, %v216_v56 }
  0xa5   :  { %v173_v39 = vadd.f32 %v169_v36, %v147_v26  ;;  %v150_v40 = vadd.f32 %v146_v37, %v124_v59  ;;  %v272_v37 = vld [vmem:[#allocation3 + $0x88] sm:$0xff] }
  0xa7   :  { %v199_v41 = vadd.f32 %v195_v38, %v173_v39  ;;  %439 = vrot.lane.b32.xlu1 %v1133_v3, %s1064_s17  ;;  %437 = vrot.lane.b32.xlu0 %v1120_v1, %s1064_s17 }
  0xa8   :  { %441 = vrot.lane.b32.xlu2 %v1115_v0, %s1064_s17 }
  0xa9   :  { %v158_v44 = vpop.permute.xlu1 %157  ;;  %v156_v45 = vpop.permute.xlu0 %155 }
  0xaa   :  { %v165_v46 = vsel %vm159_vm4, %v158_v44, 0.0  ;;  %v164_v47 = vsel %vm159_vm4, %v156_v45, 0.0  ;;  %v232_v48 = vpop.permute.xlu2 %231  ;;  %vm575_vm4 = vcmp.lt.s32.totalorder %v1178_v8, 122 }
  0xab   :  { %v172_v49 = vmul.f32 %v168_v15, %v165_v46  ;;  %v171_v50 = vmul.f32 %v167_v28, %v164_v47  ;;  %v241_v11 = vsel %vm237_vm7, %v232_v48, 0.0 }
  0xac   :  { %v248_v19 = vmul.f32 %v246_v10, %v241_v11 }
  0xad   :  { %v176_v52 = vadd.f32 %v172_v49, %v150_v40  ;;  %v175_v53 = vadd.f32 %v171_v50, %v149_v13  ;;  %v297_v50 = vld [vmem:[#allocation3 + $0x90] sm:$0xff] }
  0xaf   :  { %v202_v54 = vadd.f32 %v198_v51, %v176_v52  ;;  %463 = vrot.lane.b32.xlu1 %v1120_v1, %s1065_s18  ;;  %443 = vrot.lane.b32.xlu0 %v1128_v2, %s1064_s17 }
  0xb0   :  { %465 = vrot.lane.b32.xlu2 %v1133_v3, %s1065_s18 }
  0xb1   :  { %v182_v57 = vpop.permute.xlu1 %181  ;;  %v180_v58 = vpop.permute.xlu0 %179 }
  0xb2   :  { %v190_v59 = vsel %vm185_vm5, %v182_v57, 0.0  ;;  %v189_v60 = vsel %vm185_vm5, %v180_v58, 0.0  ;;  %v256_v61 = vpop.permute.xlu2 %255  ;;  %vm601_vm5 = vcmp.lt.s32.totalorder %v1178_v8, 121 }
  0xb3   :  { %v197_v62 = vmul.f32 %v193_v29, %v190_v59  ;;  %v196_v63 = vmul.f32 %v194_v42, %v189_v60  ;;  %v266_v25 = vsel %vm263_vm8, %v256_v61, 0.0 }
  0xb4   :  { %v273_v34 = vmul.f32 %v271_v24, %v266_v25 }
  0xb5   :  { %v201_v5 = vadd.f32 %v197_v62, %v175_v53  ;;  %v200_v6 = vadd.f32 %v196_v63, %v174_v27  ;;  %v298_v63 = vld [vmem:[#allocation3 + $0x98] sm:$0xff] }
  0xb7   :  { %v227_v7 = vadd.f32 %v223_v4, %v201_v5  ;;  %469 = vrot.lane.b32.xlu1 %v1128_v2, %s1065_s18  ;;  %467 = vrot.lane.b32.xlu0 %v1115_v0, %s1065_s18  ;;  %v324_v4 = vld [vmem:[#allocation3 + $0xa8] sm:$0xff] }
  0xb8   :  { %489 = vrot.lane.b32.xlu2 %v1120_v1, %s1066_s19 }
  0xb9   :  { %v206_v12 = vpop.permute.xlu1 %205  ;;  %v204_v13 = vpop.permute.xlu0 %203 }
  0xba   :  { %v215_v14 = vsel %vm211_vm6, %v206_v12, 0.0  ;;  %v214_v15 = vsel %vm211_vm6, %v204_v13, 0.0  ;;  %v262_v16 = vpop.permute.xlu2 %261 }
  0xbb   :  { %v222_v17 = vmul.f32 %v220_v9, %v215_v14  ;;  %v221_v18 = vmul.f32 %v219_v55, %v214_v15  ;;  %v269_v38 = vsel %vm263_vm8, %v262_v16, 0.0 }
  0xbc   :  { %v276_v46 = vmul.f32 %v272_v37, %v269_v38 }
  0xbd   :  { %v226_v20 = vadd.f32 %v222_v17, %v200_v6  ;;  %v225_v21 = vadd.f32 %v221_v18, %v199_v41  ;;  %v323_v18 = vld [vmem:[#allocation3 + $0xa0] sm:$0xff] }
  0xbf   :  { %v252_v22 = vadd.f32 %v248_v19, %v226_v20  ;;  %493 = vrot.lane.b32.xlu1 %v1115_v0, %s1066_s19  ;;  %491 = vrot.lane.b32.xlu0 %v1133_v3, %s1066_s19  ;;  %v349_v19 = vld [vmem:[#allocation3 + $0xb0] sm:$0xff] }
  0xc0   :  { %495 = vrot.lane.b32.xlu2 %v1128_v2, %s1066_s19 }
  0xc1   :  { %v230_v26 = vpop.permute.xlu1 %229  ;;  %v210_v27 = vpop.permute.xlu0 %209 }
  0xc2   :  { %v240_v28 = vsel %vm237_vm7, %v230_v26, 0.0  ;;  %v217_v29 = vsel %vm211_vm6, %v210_v27, 0.0  ;;  %v286_v30 = vpop.permute.xlu2 %285  ;;  %vm627_vm6 = vcmp.lt.s32.totalorder %v1178_v8, 120 }
  0xc3   :  { %v247_v32 = vmul.f32 %v245_v23, %v240_v28  ;;  %v224_v33 = vmul.f32 %v220_v9, %v217_v29  ;;  %v294_v51 = vsel %vm289_vm9, %v286_v30, 0.0 }
  0xc4   :  { %v301_v59 = vmul.f32 %v297_v50, %v294_v51 }
  0xc5   :  { %v251_v31 = vadd.f32 %v247_v32, %v225_v21  ;;  %v228_v35 = vadd.f32 %v224_v33, %v202_v54  ;;  %v350_v33 = vld [vmem:[#allocation3 + $0xb8] sm:$0xff] }
  0xc7   :  { %v277_v36 = vadd.f32 %v273_v34, %v251_v31  ;;  %517 = vrot.lane.b32.xlu1 %v1133_v3, %s1067_s22  ;;  %515 = vrot.lane.b32.xlu0 %v1120_v1, %s1067_s22 }
  0xc8   :  { %519 = vrot.lane.b32.xlu2 %v1115_v0, %s1067_s22 }
  0xc9   :  { %v236_v39 = vpop.permute.xlu1 %235  ;;  %v234_v40 = vpop.permute.xlu0 %233 }
  0xca   :  { %v243_v41 = vsel %vm237_vm7, %v236_v39, 0.0  ;;  %v242_v42 = vsel %vm237_vm7, %v234_v40, 0.0  ;;  %v310_v43 = vpop.permute.xlu2 %309  ;;  %vm653_vm7 = vcmp.lt.s32.totalorder %v1178_v8, 119 }
  0xcb   :  { %v250_v44 = vmul.f32 %v246_v10, %v243_v41  ;;  %v249_v45 = vmul.f32 %v245_v23, %v242_v42  ;;  %v319_v5 = vsel %vm315_vm10, %v310_v43, 0.0 }
  0xcc   :  { %v326_v14 = vmul.f32 %v324_v4, %v319_v5 }
  0xcd   :  { %v254_v47 = vadd.f32 %v250_v44, %v228_v35  ;;  %v253_v48 = vadd.f32 %v249_v45, %v227_v7  ;;  %v375_v45 = vld [vmem:[#allocation3 + $0xc0] sm:$0xff] }
  0xcf   :  { %v280_v49 = vadd.f32 %v276_v46, %v254_v47  ;;  %541 = vrot.lane.b32.xlu1 %v1120_v1, %s1068_s23  ;;  %521 = vrot.lane.b32.xlu0 %v1128_v2, %s1067_s22 }
  0xd0   :  { %543 = vrot.lane.b32.xlu2 %v1133_v3, %s1068_s23 }
  0xd1   :  { %v260_v52 = vpop.permute.xlu1 %259  ;;  %v258_v53 = vpop.permute.xlu0 %257 }
  0xd2   :  { %v268_v54 = vsel %vm263_vm8, %v260_v52, 0.0  ;;  %v267_v55 = vsel %vm263_vm8, %v258_v53, 0.0  ;;  %v334_v56 = vpop.permute.xlu2 %333  ;;  %vm679_vm8 = vcmp.lt.s32.totalorder %v1178_v8, 118 }
  0xd3   :  { %v275_v57 = vmul.f32 %v271_v24, %v268_v54  ;;  %v274_v58 = vmul.f32 %v272_v37, %v267_v55  ;;  %v344_v20 = vsel %vm341_vm11, %v334_v56, 0.0 }
  0xd4   :  { %v351_v28 = vmul.f32 %v349_v19, %v344_v20 }
  0xd5   :  { %v279_v60 = vadd.f32 %v275_v57, %v253_v48  ;;  %v278_v61 = vadd.f32 %v274_v58, %v252_v22  ;;  %v376_v58 = vld [vmem:[#allocation3 + $0xc8] sm:$0xff] }
  0xd7   :  { %v305_v62 = vadd.f32 %v301_v59, %v279_v60  ;;  %547 = vrot.lane.b32.xlu1 %v1128_v2, %s1068_s23  ;;  %545 = vrot.lane.b32.xlu0 %v1115_v0, %s1068_s23  ;;  %v402_v59 = vld [vmem:[#allocation3 + $0xd8] sm:$0xff]  ;;  %s1080_s23 = smov [#allocation6]  }
  0xd8   :  { %567 = vrot.lane.b32.xlu2 %v1120_v1, %s1069_s24 }
  0xd9   :  { %v284_v6 = vpop.permute.xlu1 %283  ;;  %v282_v7 = vpop.permute.xlu0 %281 }
  0xda   :  { %v293_v9 = vsel %vm289_vm9, %v284_v6, 0.0  ;;  %v292_v10 = vsel %vm289_vm9, %v282_v7, 0.0  ;;  %v340_v11 = vpop.permute.xlu2 %339 }
  0xdb   :  { %v300_v12 = vmul.f32 %v298_v63, %v293_v9  ;;  %v299_v13 = vmul.f32 %v297_v50, %v292_v10  ;;  %v347_v34 = vsel %vm341_vm11, %v340_v11, 0.0 }
  0xdc   :  { %v354_v41 = vmul.f32 %v350_v33, %v347_v34 }
  0xdd   :  { %v304_v15 = vadd.f32 %v300_v12, %v278_v61  ;;  %v303_v16 = vadd.f32 %v299_v13, %v277_v36  ;;  %v401_v13 = vld [vmem:[#allocation3 + $0xd0] sm:$0xff] }
  0xdf   :  { %v330_v17 = vadd.f32 %v326_v14, %v304_v15  ;;  %571 = vrot.lane.b32.xlu1 %v1115_v0, %s1069_s24  ;;  %569 = vrot.lane.b32.xlu0 %v1133_v3, %s1069_s24  ;;  %v427_v14 = vld [vmem:[#allocation3 + $0xe0] sm:$0xff] }
  0xe0   :  { %573 = vrot.lane.b32.xlu2 %v1128_v2, %s1069_s24  ;;  %s934_s24 = sshll.u32 %s1080_s23, 4  ;;  %s935_s24 = int_to_ptr.vmem [resolvable:$true] %s934_s24 }
  0xe1   :  { %v308_v21 = vpop.permute.xlu1 %307  ;;  %v288_v22 = vpop.permute.xlu0 %287 }
  0xe2   :  { %v318_v23 = vsel %vm315_vm10, %v308_v21, 0.0  ;;  %v295_v24 = vsel %vm289_vm9, %v288_v22, 0.0  ;;  %v364_v25 = vpop.permute.xlu2 %363  ;;  %vm705_vm9 = vcmp.lt.s32.totalorder %v1178_v8, 117 }
  0xe3   :  { %v325_v26 = vmul.f32 %v323_v18, %v318_v23  ;;  %v302_v27 = vmul.f32 %v298_v63, %v295_v24  ;;  %v372_v46 = vsel %vm367_vm12, %v364_v25, 0.0 }
  0xe4   :  { %v379_v54 = vmul.f32 %v375_v45, %v372_v46 }
  0xe5   :  { %v329_v29 = vadd.f32 %v325_v26, %v303_v16  ;;  %v306_v30 = vadd.f32 %v302_v27, %v280_v49  ;;  %v428_v27 = vld [vmem:[#allocation3 + $0xe8] sm:$0xff] }
  0xe7   :  { %v355_v32 = vadd.f32 %v351_v28, %v329_v29  ;;  %595 = vrot.lane.b32.xlu1 %v1133_v3, %s1070_s25  ;;  %593 = vrot.lane.b32.xlu0 %v1120_v1, %s1070_s25 }
  0xe8   :  { %597 = vrot.lane.b32.xlu2 %v1115_v0, %s1070_s25 }
  0xe9   :  { %v314_v31 = vpop.permute.xlu1 %313  ;;  %v312_v35 = vpop.permute.xlu0 %311 }
  0xea   :  { %v321_v36 = vsel %vm315_vm10, %v314_v31, 0.0  ;;  %v320_v37 = vsel %vm315_vm10, %v312_v35, 0.0  ;;  %v388_v38 = vpop.permute.xlu2 %387  ;;  %vm731_vm10 = vcmp.lt.s32.totalorder %v1178_v8, 116 }
  0xeb   :  { %v328_v39 = vmul.f32 %v324_v4, %v321_v36  ;;  %v327_v40 = vmul.f32 %v323_v18, %v320_v37  ;;  %v397_v60 = vsel %vm393_vm13, %v388_v38, 0.0 }
  0xec   :  { %v404_v9 = vmul.f32 %v402_v59, %v397_v60 }
  0xed   :  { %v332_v42 = vadd.f32 %v328_v39, %v306_v30  ;;  %v331_v43 = vadd.f32 %v327_v40, %v305_v62  ;;  %v453_v40 = vld [vmem:[#allocation3 + $0x100] sm:$0xff] }
  0xef   :  { %v358_v44 = vadd.f32 %v354_v41, %v332_v42  ;;  %619 = vrot.lane.b32.xlu1 %v1120_v1, %s1071_s1  ;;  %599 = vrot.lane.b32.xlu0 %v1128_v2, %s1070_s25 }
  0xf0   :  { %621 = vrot.lane.b32.xlu2 %v1133_v3, %s1071_s1 }
  0xf1   :  { %v338_v47 = vpop.permute.xlu1 %337  ;;  %v336_v48 = vpop.permute.xlu0 %335 }
  0xf2   :  { %v346_v49 = vsel %vm341_vm11, %v338_v47, 0.0  ;;  %v345_v50 = vsel %vm341_vm11, %v336_v48, 0.0  ;;  %v412_v51 = vpop.permute.xlu2 %411  ;;  %vm757_vm11 = vcmp.lt.s32.totalorder %v1178_v8, 115 }
  0xf3   :  { %v353_v52 = vmul.f32 %v349_v19, %v346_v49  ;;  %v352_v53 = vmul.f32 %v350_v33, %v345_v50  ;;  %v422_v15 = vsel %vm419_vm14, %v412_v51, 0.0 }
  0xf4   :  { %v429_v23 = vmul.f32 %v427_v14, %v422_v15 }
  0xf5   :  { %v357_v55 = vadd.f32 %v353_v52, %v331_v43  ;;  %v356_v56 = vadd.f32 %v352_v53, %v330_v17  ;;  %v454_v53 = vld [vmem:[#allocation3 + $0x108] sm:$0xff] }
  0xf7   :  { %v383_v57 = vadd.f32 %v379_v54, %v357_v55  ;;  %625 = vrot.lane.b32.xlu1 %v1128_v2, %s1071_s1  ;;  %623 = vrot.lane.b32.xlu0 %v1115_v0, %s1071_s1  ;;  %v480_v54 = vld [vmem:[#allocation3 + $0x118] sm:$0xff]  ;;  %s936_s1 = sshll.u32 %s1617_s4, 4  ;;  %s937_s1 = int_to_ptr.hbm [resolvable:$true] %s936_s1 }
  0xf8   :  { %645 = vrot.lane.b32.xlu2 %v1120_v1, %s1072_s26 }
  0xf9   :  { %v362_v61 = vpop.permute.xlu1 %361  ;;  %v360_v62 = vpop.permute.xlu0 %359 }
  0xfa   :  { %v371_v63 = vsel %vm367_vm12, %v362_v61, 0.0  ;;  %v370_v4 = vsel %vm367_vm12, %v360_v62, 0.0  ;;  %v418_v5 = vpop.permute.xlu2 %417 }
  0xfb   :  { %v378_v6 = vmul.f32 %v376_v58, %v371_v63  ;;  %v377_v7 = vmul.f32 %v375_v45, %v370_v4  ;;  %v425_v28 = vsel %vm419_vm14, %v418_v5, 0.0 }
  0xfc   :  { %v432_v36 = vmul.f32 %v428_v27, %v425_v28 }
  0xfd   :  { %v382_v10 = vadd.f32 %v378_v6, %v356_v56  ;;  %v381_v11 = vadd.f32 %v377_v7, %v355_v32  ;;  %v479_v7 = vld [vmem:[#allocation3 + $0x110] sm:$0xff] }
  0xff   :  { %v408_v12 = vadd.f32 %v404_v9, %v382_v10  ;;  %649 = vrot.lane.b32.xlu1 %v1115_v0, %s1072_s26  ;;  %647 = vrot.lane.b32.xlu0 %v1133_v3, %s1072_s26  ;;  %v505_v9 = vld [vmem:[#allocation3 + $0x120] sm:$0xff] }
 0x100   :  { %651 = vrot.lane.b32.xlu2 %v1128_v2, %s1072_s26 }
 0x101   :  { %v386_v16 = vpop.permute.xlu1 %385  ;;  %v366_v17 = vpop.permute.xlu0 %365 }
 0x102   :  { %v396_v18 = vsel %vm393_vm13, %v386_v16, 0.0  ;;  %v373_v19 = vsel %vm367_vm12, %v366_v17, 0.0  ;;  %v442_v20 = vpop.permute.xlu2 %441  ;;  %vm783_vm12 = vcmp.lt.s32.totalorder %v1178_v8, 114 }
 0x103   :  { %v403_v21 = vmul.f32 %v401_v13, %v396_v18  ;;  %v380_v22 = vmul.f32 %v376_v58, %v373_v19  ;;  %v450_v41 = vsel %vm445_vm15, %v442_v20, 0.0 }
 0x104   :  { %v457_v49 = vmul.f32 %v453_v40, %v450_v41 }
 0x105   :  { %v407_v24 = vadd.f32 %v403_v21, %v381_v11  ;;  %v384_v25 = vadd.f32 %v380_v22, %v358_v44  ;;  %v506_v22 = vld [vmem:[#allocation3 + $0x128] sm:$0xff] }
 0x107   :  { %v433_v26 = vadd.f32 %v429_v23, %v407_v24  ;;  %673 = vrot.lane.b32.xlu1 %v1133_v3, %s1073_s27  ;;  %671 = vrot.lane.b32.xlu0 %v1120_v1, %s1073_s27 }
 0x108   :  { %675 = vrot.lane.b32.xlu2 %v1115_v0, %s1073_s27 }
 0x109   :  { %v392_v29 = vpop.permute.xlu1 %391  ;;  %v390_v30 = vpop.permute.xlu0 %389 }
 0x10a   :  { %v399_v32 = vsel %vm393_vm13, %v392_v29, 0.0  ;;  %v398_v33 = vsel %vm393_vm13, %v390_v30, 0.0  ;;  %v466_v34 = vpop.permute.xlu2 %465  ;;  %vm809_vm13 = vcmp.lt.s32.totalorder %v1178_v8, 113 }
 0x10b   :  { %v406_v31 = vmul.f32 %v402_v59, %v399_v32  ;;  %v405_v35 = vmul.f32 %v401_v13, %v398_v33  ;;  %v475_v55 = vsel %vm471_vm0, %v466_v34, 0.0 }
 0x10c   :  { %v482_v63 = vmul.f32 %v480_v54, %v475_v55 }
 0x10d   :  { %v410_v37 = vadd.f32 %v406_v31, %v384_v25  ;;  %v409_v38 = vadd.f32 %v405_v35, %v383_v57  ;;  %v531_v35 = vld [vmem:[#allocation3 + $0x130] sm:$0xff] }
 0x10f   :  { %v436_v39 = vadd.f32 %v432_v36, %v410_v37  ;;  %697 = vrot.lane.b32.xlu1 %v1120_v1, %s1074_s28  ;;  %677 = vrot.lane.b32.xlu0 %v1128_v2, %s1073_s27 }
 0x110   :  { %699 = vrot.lane.b32.xlu2 %v1133_v3, %s1074_s28 }
 0x111   :  { %v416_v42 = vpop.permute.xlu1 %415  ;;  %v414_v43 = vpop.permute.xlu0 %413 }
 0x112   :  { %v424_v44 = vsel %vm419_vm14, %v416_v42, 0.0  ;;  %v423_v45 = vsel %vm419_vm14, %v414_v43, 0.0  ;;  %v490_v46 = vpop.permute.xlu2 %489 }
 0x113   :  { %v431_v47 = vmul.f32 %v427_v14, %v424_v44  ;;  %v430_v48 = vmul.f32 %v428_v27, %v423_v45  ;;  %v500_v10 = vsel %vm497_vm1, %v490_v46, 0.0 }
 0x114   :  { %v507_v18 = vmul.f32 %v505_v9, %v500_v10 }
 0x115   :  { %v435_v50 = vadd.f32 %v431_v47, %v409_v38  ;;  %v434_v51 = vadd.f32 %v430_v48, %v408_v12  ;;  %v558_v48 = vld [vmem:[#allocation3 + $0x148] sm:$0xff] }
 0x117   :  { %v461_v52 = vadd.f32 %v457_v49, %v435_v50  ;;  %703 = vrot.lane.b32.xlu1 %v1128_v2, %s1074_s28  ;;  %701 = vrot.lane.b32.xlu0 %v1115_v0, %s1074_s28 }
 0x118   :  { %723 = vrot.lane.b32.xlu2 %v1120_v1, %s1075_s29 }
 0x119   :  { %v440_v56 = vpop.permute.xlu1 %439  ;;  %v438_v57 = vpop.permute.xlu0 %437 }
 0x11a   :  { %v449_v58 = vsel %vm445_vm15, %v440_v56, 0.0  ;;  %v448_v59 = vsel %vm445_vm15, %v438_v57, 0.0  ;;  %v496_v60 = vpop.permute.xlu2 %495 }
 0x11b   :  { %v456_v61 = vmul.f32 %v454_v53, %v449_v58  ;;  %v455_v62 = vmul.f32 %v453_v40, %v448_v59  ;;  %v503_v23 = vsel %vm497_vm1, %v496_v60, 0.0  ;;  %v993_v59 = vld [vmem:[%s1613_s0 + $0x8] sm:$0xff]  ;;  %v557_v60 = vld [vmem:[#allocation3 + $0x140] sm:$0xff] }
 0x11c   :  { %v510_v32 = vmul.f32 %v506_v22, %v503_v23 }
 0x11d   :  { %v460_v4 = vadd.f32 %v456_v61, %v434_v51  ;;  %v459_v5 = vadd.f32 %v455_v62, %v433_v26  ;;  %v583_v61 = vld [vmem:[#allocation3 + $0x150] sm:$0xff] }
 0x11f   :  { %v486_v6 = vadd.f32 %v482_v63, %v460_v4  ;;  %727 = vrot.lane.b32.xlu1 %v1115_v0, %s1075_s29  ;;  %725 = vrot.lane.b32.xlu0 %v1133_v3, %s1075_s29  ;;  %v994_v63 = vld [vmem:[%s1613_s0 + $0x18] sm:$0xff] }
 0x120   :  { %729 = vrot.lane.b32.xlu2 %v1128_v2, %s1075_s29 }
 0x121   :  { %v464_v11 = vpop.permute.xlu1 %463  ;;  %v444_v12 = vpop.permute.xlu0 %443 }
 0x122   :  { %v474_v13 = vsel %vm471_vm0, %v464_v11, 0.0  ;;  %v451_v14 = vsel %vm445_vm15, %v444_v12, 0.0  ;;  %v520_v15 = vpop.permute.xlu2 %519 }
 0x123   :  { %v481_v16 = vmul.f32 %v479_v7, %v474_v13  ;;  %v458_v17 = vmul.f32 %v454_v53, %v451_v14  ;;  %v528_v36 = vsel %vm523_vm2, %v520_v15, 0.0 }
 0x124   :  { %v535_v44 = vmul.f32 %v531_v35, %v528_v36 }
 0x125   :  { %v485_v19 = vadd.f32 %v481_v16, %v459_v5  ;;  %v462_v20 = vadd.f32 %v458_v17, %v436_v39  ;;  %v584_v16 = vld [vmem:[#allocation3 + $0x158] sm:$0xff] }
 0x127   :  { %v511_v21 = vadd.f32 %v507_v18, %v485_v19  ;;  %751 = vrot.lane.b32.xlu1 %v1133_v3, %s1076_s30  ;;  %749 = vrot.lane.b32.xlu0 %v1120_v1, %s1076_s30 }
 0x128   :  { %753 = vrot.lane.b32.xlu2 %v1115_v0, %s1076_s30 }
 0x129   :  { %v470_v24 = vpop.permute.xlu1 %469  ;;  %v468_v25 = vpop.permute.xlu0 %467 }
 0x12a   :  { %v477_v26 = vsel %vm471_vm0, %v470_v24, 0.0  ;;  %v476_v27 = vsel %vm471_vm0, %v468_v25, 0.0  ;;  %v544_v28 = vpop.permute.xlu2 %543 }
 0x12b   :  { %v484_v29 = vmul.f32 %v480_v54, %v477_v26  ;;  %v483_v30 = vmul.f32 %v479_v7, %v476_v27  ;;  %v553_v49 = vsel %vm549_vm3, %v544_v28, 0.0 }
 0x12d   :  { %v488_v33 = vadd.f32 %v484_v29, %v462_v20  ;;  %v487_v34 = vadd.f32 %v483_v30, %v461_v52  ;;  %v609_v29 = vld [vmem:[#allocation3 + $0x160] sm:$0xff] }
 0x12f   :  { %v514_v31 = vadd.f32 %v510_v32, %v488_v33  ;;  %775 = vrot.lane.b32.xlu1 %v1120_v1, %s1077_s5  ;;  %755 = vrot.lane.b32.xlu0 %v1128_v2, %s1076_s30 }
 0x130   :  { %777 = vrot.lane.b32.xlu2 %v1133_v3, %s1077_s5  ;;  %v532_v3 = vld [vmem:[#allocation3 + $0x138] sm:$0xff] }
 0x131   :  { %v494_v37 = vpop.permute.xlu1 %493  ;;  %v492_v38 = vpop.permute.xlu0 %491 }
 0x132   :  { %v502_v39 = vsel %vm497_vm1, %v494_v37, 0.0  ;;  %v501_v40 = vsel %vm497_vm1, %v492_v38, 0.0  ;;  %v568_v41 = vpop.permute.xlu2 %567 }
 0x133   :  { %v509_v42 = vmul.f32 %v505_v9, %v502_v39  ;;  %v508_v43 = vmul.f32 %v506_v22, %v501_v40  ;;  %v578_v62 = vsel %vm575_vm4, %v568_v41, 0.0 }
 0x134   :  { %v585_v12 = vmul.f32 %v583_v61, %v578_v62 }
 0x135   :  { %v513_v45 = vadd.f32 %v509_v42, %v487_v34  ;;  %v512_v46 = vadd.f32 %v508_v43, %v486_v6  ;;  %v610_v42 = vld [vmem:[#allocation3 + $0x168] sm:$0xff]  ;;  %v636_v43 = vld [vmem:[#allocation3 + $0x178] sm:$0xff] }
 0x137   :  { %v539_v47 = vadd.f32 %v535_v44, %v513_v45  ;;  %781 = vrot.lane.b32.xlu1 %v1128_v2, %s1077_s5  ;;  %779 = vrot.lane.b32.xlu0 %v1115_v0, %s1077_s5  ;;  %v560_v0 = vmul.f32 %v558_v48, %v553_v49 }
 0x138   :  { %801 = vrot.lane.b32.xlu2 %v1120_v1, %s1078_s6  ;;  %v992_v1 = vld [vmem:[%s1613_s0 + $0x10] sm:$0xff] }
 0x139   :  { %v518_v50 = vpop.permute.xlu1 %517  ;;  %v516_v51 = vpop.permute.xlu0 %515 }
 0x13a   :  { %v527_v52 = vsel %vm523_vm2, %v518_v50, 0.0  ;;  %v526_v53 = vsel %vm523_vm2, %v516_v51, 0.0  ;;  %v574_v54 = vpop.permute.xlu2 %573 }
 0x13b   :  { %v534_v2 = vmul.f32 %v532_v3, %v527_v52  ;;  %v533_v55 = vmul.f32 %v531_v35, %v526_v53  ;;  %v581_v17 = vsel %vm575_vm4, %v574_v54, 0.0 }
 0x13c   :  { %v588_v25 = vmul.f32 %v584_v16, %v581_v17 }
 0x13d   :  { %v538_v56 = vadd.f32 %v534_v2, %v512_v46  ;;  %v537_v57 = vadd.f32 %v533_v55, %v511_v21  ;;  %v635_v2 = vld [vmem:[#allocation3 + $0x170] sm:$0xff] }
 0x13f   :  { %v564_v58 = vadd.f32 %v560_v0, %v538_v56  ;;  %805 = vrot.lane.b32.xlu1 %v992_v1, %s1078_s6  ;;  %803 = vrot.lane.b32.xlu0 %v993_v59, %s1078_s6 }
 0x140   :  { %807 = vrot.lane.b32.xlu2 %v994_v63, %s1078_s6 }
 0x141   :  { %v542_v4 = vpop.permute.xlu1 %541  ;;  %v522_v5 = vpop.permute.xlu0 %521 }
 0x142   :  { %v552_v6 = vsel %vm549_vm3, %v542_v4, 0.0  ;;  %v529_v7 = vsel %vm523_vm2, %v522_v5, 0.0  ;;  %v598_v9 = vpop.permute.xlu2 %597 }
 0x143   :  { %v559_v10 = vmul.f32 %v557_v60, %v552_v6  ;;  %v536_v11 = vmul.f32 %v532_v3, %v529_v7  ;;  %v606_v30 = vsel %vm601_vm5, %v598_v9, 0.0 }
 0x144   :  { %v613_v38 = vmul.f32 %v609_v29, %v606_v30 }
 0x145   :  { %v563_v13 = vadd.f32 %v559_v10, %v537_v57  ;;  %v540_v14 = vadd.f32 %v536_v11, %v514_v31 }
 0x147   :  { %v589_v15 = vadd.f32 %v585_v12, %v563_v13 }
 0x149   :  { %v548_v18 = vpop.permute.xlu1 %547  ;;  %v546_v19 = vpop.permute.xlu0 %545 }
 0x14a   :  { %v555_v20 = vsel %vm549_vm3, %v548_v18, 0.0  ;;  %v554_v21 = vsel %vm549_vm3, %v546_v19, 0.0  ;;  %v622_v22 = vpop.permute.xlu2 %621 }
 0x14b   :  { %v562_v23 = vmul.f32 %v558_v48, %v555_v20  ;;  %v561_v24 = vmul.f32 %v557_v60, %v554_v21  ;;  %v631_v44 = vsel %vm627_vm6, %v622_v22, 0.0  ;;  %v661_v20 = vld [vmem:[#allocation3 + $0x180] sm:$0xff] }
 0x14c   :  { %v638_v51 = vmul.f32 %v636_v43, %v631_v44 }
 0x14d   :  { %v566_v26 = vadd.f32 %v562_v23, %v540_v14  ;;  %v565_v27 = vadd.f32 %v561_v24, %v539_v47 }
 0x14f   :  { %v592_v28 = vadd.f32 %v588_v25, %v566_v26 }
 0x151   :  { %v572_v32 = vpop.permute.xlu1 %571  ;;  %v570_v33 = vpop.permute.xlu0 %569 }
 0x152   :  { %v580_v34 = vsel %vm575_vm4, %v572_v32, 0.0  ;;  %v579_v31 = vsel %vm575_vm4, %v570_v33, 0.0  ;;  %v646_v35 = vpop.permute.xlu2 %645 }
 0x153   :  { %v587_v36 = vmul.f32 %v583_v61, %v580_v34  ;;  %v586_v37 = vmul.f32 %v584_v16, %v579_v31  ;;  %v656_v21 = vsel %vm653_vm7, %v646_v35, 0.0  ;;  %v687_v31 = vld [vmem:[#allocation3 + $0x190] sm:$0xff]  ;;  %v713_v35 = vld [vmem:[#allocation3 + $0x1a0] sm:$0xff] }
 0x154   :  { %v663_v24 = vmul.f32 %v661_v20, %v656_v21 }
 0x155   :  { %v591_v39 = vadd.f32 %v587_v36, %v565_v27  ;;  %v590_v40 = vadd.f32 %v586_v37, %v564_v58 }
 0x157   :  { %v1464_v41 = vadd.f32 %v613_v38, %v591_v39  ;;  %v714_v39 = vld [vmem:[#allocation3 + $0x1a8] sm:$0xff] }
 0x159   :  { %v596_v45 = vpop.permute.xlu1 %595  ;;  %v594_v46 = vpop.permute.xlu0 %593 }
 0x15a   :  { %v605_v47 = vsel %vm601_vm5, %v596_v45, 0.0  ;;  %v604_v3 = vsel %vm601_vm5, %v594_v46, 0.0  ;;  %v652_v48 = vpop.permute.xlu2 %651  ;;  %v688_v46 = vld [vmem:[#allocation3 + $0x198] sm:$0xff] }
 0x15b   :  { %v612_v49 = vmul.f32 %v610_v42, %v605_v47  ;;  %v611_v50 = vmul.f32 %v609_v29, %v604_v3  ;;  %v662_v29 = vld [vmem:[#allocation3 + $0x188] sm:$0xff]  ;;  %v659_v30 = vsel %vm653_vm7, %v652_v48, 0.0 }
 0x15c   :  { %v666_v45 = vmul.f32 %v662_v29, %v659_v30 }
 0x15d   :  { %v616_v52 = vadd.f32 %v612_v49, %v590_v40  ;;  %v615_v53 = vadd.f32 %v611_v50, %v589_v15  ;;  %v739_v50 = vld [vmem:[#allocation3 + $0x1b0] sm:$0xff] }
 0x15f   :  { %v1472_v54 = vadd.f32 %v638_v51, %v616_v52 }
 0x161   :  { %v620_v55 = vpop.permute.xlu1 %619  ;;  %v600_v0 = vpop.permute.xlu0 %599 }
 0x162   :  { %v630_v56 = vsel %vm627_vm6, %v620_v55, 0.0  ;;  %v607_v57 = vsel %vm601_vm5, %v600_v0, 0.0  ;;  %v676_v58 = vpop.permute.xlu2 %675 }
 0x163   :  { %v637_v1 = vmul.f32 %v635_v2, %v630_v56  ;;  %v614_v59 = vmul.f32 %v610_v42, %v607_v57  ;;  %v684_v32 = vsel %vm679_vm8, %v676_v58, 0.0 }
 0x165   :  { %v641_v60 = vadd.f32 %v637_v1, %v615_v53  ;;  %v618_v61 = vadd.f32 %v614_v59, %v592_v28 }
 0x169   :  { %v626_v62 = vpop.permute.xlu1 %625  ;;  %v624_v63 = vpop.permute.xlu0 %623 }
 0x16a   :  { %v700_v4 = vpop.permute.xlu2 %699  ;;  %v633_v22 = vsel %vm627_vm6, %v626_v62, 0.0  ;;  %v632_v23 = vsel %vm627_vm6, %v624_v63, 0.0 }
 0x16b   :  { %v640_v25 = vmul.f32 %v636_v43, %v633_v22  ;;  %v639_v33 = vmul.f32 %v635_v2, %v632_v23  ;;  %v709_v40 = vsel %vm705_vm9, %v700_v4, 0.0  ;;  %v667_v43 = vadd.f32 %v663_v24, %v641_v60 }
 0x16c   :  { %v691_v2 = vmul.f32 %v687_v31, %v684_v32  ;;  %v716_v55 = vmul.f32 %v714_v39, %v709_v40 }
 0x16d   :  { %v644_v44 = vadd.f32 %v640_v25, %v618_v61  ;;  %v643_v56 = vadd.f32 %v639_v33, %v1464_v41 }
 0x16f   :  { %v670_v1 = vadd.f32 %v666_v45, %v644_v44  ;;  %v792_v44 = vld [vmem:[#allocation3 + $0x1d8] sm:$0xff] }
 0x171   :  { %v650_v5 = vpop.permute.xlu1 %649  ;;  %v648_v6 = vpop.permute.xlu0 %647 }
 0x172   :  { %v724_v7 = vpop.permute.xlu2 %723  ;;  %v657_v34 = vsel %vm653_vm7, %v648_v6, 0.0  ;;  %v658_v37 = vsel %vm653_vm7, %v650_v5, 0.0  ;;  %v740_v6 = vld [vmem:[#allocation3 + $0x1b8] sm:$0xff] }
 0x173   :  { %v664_v48 = vmul.f32 %v662_v29, %v657_v34  ;;  %v734_v51 = vsel %vm731_vm10, %v724_v7, 0.0  ;;  %v665_v53 = vmul.f32 %v661_v20, %v658_v37  ;;  %v817_v29 = vld [vmem:[#allocation3 + $0x1e0] sm:$0xff] }
 0x174   :  { %v741_v59 = vmul.f32 %v739_v50, %v734_v51 }
 0x175   :  { %v668_v4 = vadd.f32 %v664_v48, %v1472_v54  ;;  %v669_v7 = vadd.f32 %v665_v53, %v643_v56 }
 0x179   :  { %v674_v9 = vpop.permute.xlu1 %673  ;;  %v672_v10 = vpop.permute.xlu0 %671 }
 0x17a   :  { %v1478_v11 = vpop.permute.xlu2 %729  ;;  %v682_v26 = vsel %vm679_vm8, %v672_v10, 0.0  ;;  %v683_v47 = vsel %vm679_vm8, %v674_v9, 0.0  ;;  %v765_v10 = vld [vmem:[#allocation3 + $0x1c0] sm:$0xff] }
 0x17b   :  { %v689_v38 = vmul.f32 %v687_v31, %v682_v26  ;;  %v690_v57 = vmul.f32 %v688_v46, %v683_v47  ;;  %v737_v41 = vsel %vm731_vm10, %v1478_v11, 0.0  ;;  %v766_v26 = vld [vmem:[#allocation3 + $0x1c8] sm:$0xff]  ;;  %v695_v31 = vadd.f32 %v691_v2, %v669_v7 }
 0x17c   :  { %v744_v22 = vmul.f32 %v740_v6, %v737_v41 }
 0x17d   :  { %v693_v58 = vadd.f32 %v689_v38, %v667_v43 }
 0x181   :  { %v698_v12 = vpop.permute.xlu1 %697  ;;  %v678_v13 = vpop.permute.xlu0 %677 }
 0x182   :  { %v1480_v14 = vpop.permute.xlu2 %753  ;;  %v708_v36 = vsel %vm705_vm9, %v698_v12, 0.0  ;;  %v685_v42 = vsel %vm679_vm8, %v678_v13, 0.0  ;;  %v791_v12 = vld [vmem:[#allocation3 + $0x1d0] sm:$0xff] }
 0x183   :  { %v715_v49 = vmul.f32 %v713_v35, %v708_v36  ;;  %v692_v0 = vmul.f32 %v688_v46, %v685_v42  ;;  %v818_v46 = vld [vmem:[#allocation3 + $0x1e8] sm:$0xff] }
 0x185   :  { %v719_v5 = vadd.f32 %v715_v49, %v693_v58  ;;  %v696_v9 = vadd.f32 %v692_v0, %v670_v1  ;;  %v832_v58 = vstv %s1615_s2 }
 0x187   :  { %v745_v24 = vadd.f32 %v741_v59, %v719_v5 }
 0x189   :  { %v704_v15 = vpop.permute.xlu1 %703  ;;  %v1482_v16 = vpop.permute.xlu0 %701 }
 0x18a   :  { %v1489_v19 = vpop.permute.xlu2 %777  ;;  %v711_v52 = vsel %vm705_vm9, %v704_v15, 0.0  ;;  %v694_v15 = vadd.f32 %v690_v57, %v668_v4  ;;  %v710_v54 = vsel %vm705_vm9, %v1482_v16, 0.0 }
 0x18b   :  { %v718_v60 = vmul.f32 %v714_v39, %v711_v52  ;;  %v717_v30 = vmul.f32 %v713_v35, %v710_v54  ;;  %v787_v48 = vsel %vm783_vm12, %v1489_v19, 0.0 }
 0x18c   :  { %v794_v56 = vmul.f32 %v792_v44, %v787_v48 }
 0x18d   :  { %v722_v21 = vadd.f32 %v718_v60, %v696_v9 }
 0x18f   :  { %v748_v38 = vadd.f32 %v744_v22, %v722_v21 }
 0x191   :  { %v1484_v17 = vpop.permute.xlu1 %727  ;;  %v1486_v18 = vpop.permute.xlu0 %725 }
 0x192   :  { %v802_v3 = vpop.permute.xlu2 %801  ;;  %v735_v23 = vsel %vm731_vm10, %v1486_v18, 0.0  ;;  %v736_v25 = vsel %vm731_vm10, %v1484_v17, 0.0  ;;  %v720_v18 = vadd.f32 %v716_v55, %v694_v15  ;;  %v762_v17 = vsel %vm757_vm11, %v1480_v14, 0.0 }
 0x193   :  { %v812_v16 = vsel %vm809_vm13, %v802_v3, 0.0  ;;  %v742_v36 = vmul.f32 %v740_v6, %v735_v23  ;;  %v743_v39 = vmul.f32 %v739_v50, %v736_v25  ;;  %v721_v3 = vadd.f32 %v717_v30, %v695_v31 }
 0x194   :  { %v819_v40 = vmul.f32 %v817_v29, %v812_v16  ;;  %v769_v53 = vmul.f32 %v765_v10, %v762_v17  ;;  %v1079_v16 = vmov 0  }
 0x195   :  { %v746_v50 = vadd.f32 %v742_v36, %v720_v18  ;;  %v747_v52 = vadd.f32 %v743_v39, %v721_v3  ;;  %985 = vset.pattern.permute.xlu0 %v1079_v16  ;;  %987 = vset.pattern.permute.xlu2 %v1079_v16 }
 0x196   :  { %986 = vset.pattern.permute.xlu1 %v1079_v16 }
 0x197   :  { %v773_v59 = vadd.f32 %v769_v53, %v747_v52  ;;  %v949_v53 = vld [vmem:[%s1616_s3 + $0x10] sm:$0xff] }
 0x199   :  { %v1501_v27 = vpop.permute.xlu1 %751  ;;  %v750_v28 = vpop.permute.xlu0 %749 }
 0x19a   :  { %v760_v61 = vsel %vm757_vm11, %v750_v28, 0.0  ;;  %v761_v32 = vsel %vm757_vm11, %v1501_v27, 0.0  ;;  %v808_v34 = vpop.permute.xlu2 %807 }
 0x19b   :  { %v767_v20 = vmul.f32 %v765_v10, %v760_v61  ;;  %v768_v35 = vmul.f32 %v766_v26, %v761_v32  ;;  %v815_v47 = vsel %vm809_vm13, %v808_v34, 0.0 }
 0x19c   :  { %v822_v55 = vmul.f32 %v818_v46, %v815_v47 }
 0x19d   :  { %v771_v37 = vadd.f32 %v767_v20, %v745_v24  ;;  %v772_v0 = vadd.f32 %v768_v35, %v746_v50 }
 0x1a1   :  { %v776_v62 = vpop.permute.xlu1 %775  ;;  %v756_v63 = vpop.permute.xlu0 %755 }
 0x1a2   :  { %v786_v13 = vsel %vm783_vm12, %v776_v62, 0.0  ;;  %v763_v11 = vsel %vm757_vm11, %v756_v63, 0.0  ;;  %v798_v62 = vadd.f32 %v794_v56, %v772_v0 }
 0x1a3   :  { %v793_v28 = vmul.f32 %v791_v12, %v786_v13  ;;  %v770_v33 = vmul.f32 %v766_v26, %v763_v11 }
 0x1a5   :  { %v797_v45 = vadd.f32 %v793_v28, %v771_v37  ;;  %v774_v49 = vadd.f32 %v770_v33, %v748_v38 }
 0x1a7   :  { %v823_v57 = vadd.f32 %v819_v40, %v797_v45 }
 0x1a9   :  { %v782_v42 = vpop.permute.xlu1 %781  ;;  %v780_v43 = vpop.permute.xlu0 %779  ;;  %v833_v63 = vmul.f32 %v832_v58, %v823_v57  ;;  %vm828_vm14 = vcmp.gt.f32.partialorder %v823_v57, 0.0 }
 0x1aa   :  { %v789_v27 = vsel %vm783_vm12, %v782_v42, 0.0  ;;  %v788_v51 = vsel %vm783_vm12, %v780_v43, 0.0 }
 0x1ab   :  { %v796_v14 = vmul.f32 %v792_v44, %v789_v27  ;;  %v795_v1 = vmul.f32 %v791_v12, %v788_v51  ;;  %v1571_v12 = vsel %vm828_vm14, %v823_v57, %v833_v63  ;;  %v888_v57 = vld [vmem:[%s1616_s3 + $0x8] sm:$0xff] }
 0x1ac   :  { %v847_v23 = vmul.f32 %v1571_v12, %v1571_v12 }
 0x1ad   :  { %v800_v2 = vadd.f32 %v796_v14, %v774_v49  ;;  %v799_v6 = vadd.f32 %v795_v1, %v773_v59  ;;  %v887_v49 = vld [vmem:[%s1616_s3] sm:$0xff] }
 0x1af   :  { %v826_v19 = vadd.f32 %v822_v55, %v800_v2 }
 0x1b1   :  { %v806_v60 = vpop.permute.xlu1 %805  ;;  %v804_v61 = vpop.permute.xlu0 %803  ;;  %v836_v9 = vmul.f32 %v832_v58, %v826_v19  ;;  %vm831_vm15 = vcmp.gt.f32.partialorder %v826_v19, 0.0 }
 0x1b2   :  { %v814_v4 = vsel %vm809_vm13, %v806_v60, 0.0  ;;  %v813_v5 = vsel %vm809_vm13, %v804_v61, 0.0 }
 0x1b3   :  { %v821_v41 = vmul.f32 %v817_v29, %v814_v4  ;;  %v820_v7 = vmul.f32 %v818_v46, %v813_v5  ;;  %v1575_v11 = vsel %vm831_vm15, %v826_v19, %v836_v9  ;;  %v950_v19 = vld [vmem:[%s1616_s3 + $0x18] sm:$0xff] }
 0x1b4   :  { %v850_v28 = vmul.f32 %v1575_v11, %v1575_v11 }
 0x1b5   :  { %v825_v10 = vadd.f32 %v821_v41, %v799_v6  ;;  %v824_v13 = vadd.f32 %v820_v7, %v798_v62 }
 0x1b7   :  { %v835_v15 = vmul.f32 %v832_v58, %v825_v10  ;;  %v834_v54 = vmul.f32 %v832_v58, %v824_v13  ;;  %vm829_vm0 = vcmp.gt.f32.partialorder %v824_v13, 0.0  ;;  %vm830_vm1 = vcmp.gt.f32.partialorder %v825_v10, 0.0 }
 0x1b9   :  { %v1573_v20 = vsel %vm829_vm0, %v824_v13, %v834_v54  ;;  %v1577_v8 = vsel %vm830_vm1, %v825_v10, %v835_v15 }
 0x1ba   :  { %v844_v21 = vadd.f32 %v1575_v11, %v1573_v20  ;;  %v841_v22 = vadd.f32 %v1577_v8, %v1571_v12  ;;  %v849_v24 = vmul.f32 %v1577_v8, %v1577_v8  ;;  %v848_v26 = vmul.f32 %v1573_v20, %v1573_v20 }
 0x1bc   :  { %845 = vadd.xlane.f32.xlu1 %v844_v21  ;;  %842 = vadd.xlane.f32.xlu0 %v841_v22  ;;  %v851_v25 = vadd.f32 %v849_v24, %v847_v23  ;;  %v854_v29 = vadd.f32 %v850_v28, %v848_v26 }
 0x1be   :  { %852 = vadd.xlane.f32.xlu2 %v851_v25 }
 0x1c6   :  { %855 = vadd.xlane.f32.xlu2 %v854_v29 }
 0x22f   :  { %v843_v30 = vpop.xlane.xlu0 %842  ;;  %v846_v18 = vpop.xlane.xlu1 %845 }
 0x230   :  { %v857_v32 = vmul.f32 0.00390625, %v843_v30  ;;  %v858_v37 = vmul.f32 0.00390625, %v846_v18 }
 0x231   :  { %v853_v33 = vpop.xlane.xlu2 %852 }
 0x232   :  { %v861_v34 = vmul.f32 %v857_v32, %v857_v32  ;;  %v859_v31 = vmul.f32 0.00390625, %v853_v33  ;;  %v862_v17 = vmul.f32 %v858_v37, %v858_v37 }
 0x234   :  { %v863_v36 = vsub.f32 %v859_v31, %v861_v34 }
 0x236   :  { %v865_v38 = vadd.f32 1e-05, %v863_v36 }
 0x238   :  { %988 = vrsqrt.f32 %v865_v38  ;;  %vm873_vm3 = vweird.f32 %v865_v38 }
 0x239   :  { %v856_v39 = vpop.xlane.xlu2 %855 }
 0x23a   :  { %v860_v40 = vmul.f32 0.00390625, %v856_v39 }
 0x23c   :  { %v864_v42 = vsub.f32 %v860_v40, %v862_v17 }
 0x23e   :  { %v989_v43 = vpop.eup %988  ;;  %v866_v35 = vadd.f32 1e-05, %v864_v42 }
 0x23f   :  { %v868_v44 = vmul.f32 %v989_v43, %v865_v38  ;;  %vm874_vm2 = vweird.f32 %v989_v43 }
 0x240   :  { %990 = vrsqrt.f32 %v866_v35  ;;  %vm875_vm4 = vmor %vm873_vm3, %vm874_vm2  ;;  %vm883_vm6 = vweird.f32 %v866_v35 }
 0x241   :  { %v869_v45 = vmul.f32 %v989_v43, %v868_v44 }
 0x243   :  { %v870_v27 = vmul.f32 0.5, %v869_v45 }
 0x245   :  { %v871_v46 = vsub.f32 1.5, %v870_v27 }
 0x246   :  { %v991_v47 = vpop.eup %990 }
 0x247   :  { %v878_v3 = vmul.f32 %v991_v47, %v866_v35  ;;  %v872_v48 = vmul.f32 %v989_v43, %v871_v46  ;;  %vm884_vm5 = vweird.f32 %v991_v47 }
 0x248   :  { %vm885_vm7 = vmor %vm883_vm6, %vm884_vm5 }
 0x249   :  { %v879_v14 = vmul.f32 %v991_v47, %v878_v3  ;;  %v876_v50 = vsel %vm875_vm4, %v989_v43, %v872_v48 }
 0x24a   :  { %v889_v51 = vmul.f32 %v887_v49, %v876_v50 }
 0x24b   :  { %v880_v52 = vmul.f32 0.5, %v879_v14 }
 0x24c   :  { %900 = vperm.xlu0 %985, %v889_v51   ;;  %v894_v2 = vmul.f32 %v889_v51, %v857_v32 }
 0x24d   :  { %v881_v55 = vsub.f32 1.5, %v880_v52 }
 0x24e   :  { %v896_v0 = vsub.f32 %v949_v53, %v894_v2 }
 0x24f   :  { %v882_v56 = vmul.f32 %v991_v47, %v881_v55 }
 0x250   :  { %914 = vperm.xlu2 %987, %v896_v0  }
 0x251   :  { %v886_v58 = vsel %vm885_vm7, %v991_v47, %v882_v56 }
 0x252   :  { %v890_v1 = vmul.f32 %v888_v57, %v886_v58 }
 0x254   :  { %905 = vperm.xlu1 %986, %v890_v1   ;;  %v895_v59 = vmul.f32 %v890_v1, %v858_v37 }
 0x256   :  { %v897_v60 = vsub.f32 %v950_v19, %v895_v59 }
 0x25c   :  { %919 = vperm.xlu1 %986, %v897_v60  }
 0x2aa   :  { %v915_v4 = vpop.permute.xlu2 %914 }
 0x2be   :  { %v901_v61 = vpop.permute.xlu0 %900 }
 0x2bf   :  { %v908_v62 = vmul.f32 %v901_v61, %v1571_v12  ;;  %v910_v63 = vmul.f32 %v901_v61, %v1577_v8 }
 0x2c1   :  { %v922_v5 = vadd.f32 %v915_v4, %v908_v62  ;;  %v924_v6 = vadd.f32 %v915_v4, %v910_v63 }
 0x2c3   :  { %926 = vst [vmem:[#allocation6] sm:$0xff] %v922_v5 }
 0x2c4   :  { %928 = vst [vmem:[#allocation6 + $0x10] sm:$0xff] %v924_v6 }
 0x2c6   :  { %v906_v41 = vpop.permute.xlu1 %905 }
 0x2c7   :  { %v909_v7 = vmul.f32 %v906_v41, %v1573_v20  ;;  %v911_v9 = vmul.f32 %v906_v41, %v1575_v11 }
 0x2ce   :  { %v920_v10 = vpop.permute.xlu1 %919 }
 0x2cf   :  { %v923_v13 = vadd.f32 %v920_v10, %v909_v7  ;;  %v925_v12 = vadd.f32 %v920_v10, %v911_v9 }
 0x2d1   :  { %927 = vst [vmem:[#allocation6 + $0x8] sm:$0xff] %v923_v13 }
 0x2d2   :  { %929 = vst [vmem:[#allocation6 + $0x18] sm:$0xff] %v925_v12 }
 0x2d3   :  { %942 = dma.vmem_to_hbm [thread:$0]  %s935_s24, 512, %s937_s1, [#allocation5], %s1048_s20, %s1048_s20, %s1049_s21  }
 0x2d4   :  { %1045 = dma.done.wait [#allocation5], 512  }
 0x2d5   :  { %1046 = vsyncadd [#allocation5], 4294966784 }
 0x2d6   :  { %947 = vsyncpa [#allocation4], 1 }
 0x2d7   :  { %948 = vsyncpa [#allocation5], 1 }

</bundles_post_ra>
